<compile_context>
chip_gen: v7x
topology: tpu7x:2x2x1
jax: 0.10.0
libtpu: 0.0.40
codegen_flags: <defaults>
</compile_context>

<pallas_src>
import math
import jax
import jax.numpy as jnp
from jax.experimental import pallas as pl
from jax.experimental.pallas import tpu as pltpu

# ---------------- configuration (small, deterministic) ----------------
B = 2            # batch
S = 8            # sequence length
H = 32           # hidden size (stands in for 768)
NH = 2           # attention heads
DH = H // NH     # head dim
I = 64           # FFN intermediate size
L = 2            # encoder layers
C = 4            # n_classes
VOCAB = 50
LN_EPS = 1e-12
CLASS_WEIGHTS = [1.0, 2.0, 0.5, 1.5]

T = B * S                  # tokens
H3 = 3 * H                 # fused QKV output width
W_IN_COLS = H3 + H + I     # per-layer [wqkv | wo | wi] fused column count (96+32+64 = 192)

VEC_W = 128                # lane-dense bias/LN slab width (full unmasked row loads)

# per-layer vector-slab rows (lvec: (L, 8, 128))
RL_BQKV, RL_BO, RL_LN1G, RL_LN1B, RL_BI, RL_BO2, RL_LN2G, RL_LN2B = range(8)
L_ROWS = 8
# global vector-slab rows (gvec: (8, 128))
RG_EMB_G, RG_EMB_B, RG_BP, RG_BC, RG_CW = range(5)
G_ROWS = 8


# ---------------- Pallas kernel (one grid step == one encoder layer) ----------------
def bert_classifier_kernel(
    emb_ref,      # (T, H)   f32   embeddings (pre-LayerNorm)
    mask_ref,     # (B,1,S)  f32   additive attention mask
    labels_ref,   # (B, 1)   int32
    gvec_ref,     # (8, 128) f32   [emb_g, emb_b, bp, bc, class_weights] rows
    wpc_ref,      # (H, H+C) bf16  [pooler | classifier] weights, (in, out)
    lvec_ref,     # (1, 8, 128) f32  per-layer bias/LN rows (blocked over L)
    w_in_ref,     # (1, H, 192) bf16 per-layer [wqkv|wo|wi], (in, out)
    wo2_ref,      # (1, I, H)   bf16 per-layer FFN output projection, (in, out)
    loss_ref,     # (1, 1) f32 output
    out_ref,      # (B, C) f32 output
    x_ref,        # VMEM scratch (T, H) f32 — activations, persists across layer steps
):
    f32 = jnp.float32
    bf16 = jnp.bfloat16
    l = pl.program_id(0)

    gv = gvec_ref[...]          # (8,128) full unmasked load
    lv = lvec_ref[0]            # (8,128) full unmasked load of this layer's rows

    def grow(r, w):             # global bias/LN row -> (1, w), in-register static slice
        return gv[r:r + 1, 0:w]

    def lrow(r, w):             # per-layer bias/LN row -> (1, w)
        return lv[r:r + 1, 0:w]

    def dense(x, w, b):
        # x: (M, K) f32, w: (K, N) bf16 pre-transposed on host, b: (1, N) f32
        y = jnp.dot(x.astype(bf16), w, preferred_element_type=f32)
        return y + b

    def layer_norm(x, g, b):
        mu = jnp.mean(x, axis=-1, keepdims=True)
        d = x - mu
        var = jnp.mean(d * d, axis=-1, keepdims=True)
        return d * jax.lax.rsqrt(var + LN_EPS) * g + b

    def gelu(x):
        # TODO(synk): HF BERT uses exact erf-GELU; tanh approximation used here.
        return 0.5 * x * (1.0 + jnp.tanh(0.7978845608028654 *
                                         (x + 0.044715 * x * x * x)))

    # ---- embeddings LayerNorm (only at the first layer step) ----
    @pl.when(l == 0)
    def _():
        x_ref[...] = layer_norm(emb_ref[...], grow(RG_EMB_G, H), grow(RG_EMB_B, H))

    # ---- one encoder layer; layer-l weights streamed in by the BlockSpecs ----
    x = x_ref[...]                                            # (T, H) f32

    wqkv = w_in_ref[0, :, 0:H3]                               # (H, 3H) bf16
    wo = w_in_ref[0, :, H3:H3 + H]                            # (H, H)
    wi = w_in_ref[0, :, H3 + H:W_IN_COLS]                     # (H, I)
    wo2 = wo2_ref[0]                                          # (I, H)

    # fused QKV projection: one MXU matmul with N = 3H
    qkv = dense(x, wqkv, lrow(RL_BQKV, H3))                   # (T, 3H) f32
    qkv3 = qkv.reshape(B, S, H3)                              # free major-dim split

    inv_sqrt_dh = 1.0 / math.sqrt(DH)
    mask3 = mask_ref[...]                                     # (B, 1, S)

    # attention, batched over B; static unroll over the NH=2 heads
    # (a single (B*NH)-batched contraction would need a sublane<->major transpose —
    #  skipped for lowering safety at these tiny head sizes).
    ctx_heads = []
    for h in range(NH):
        qs = qkv3[:, :, h * DH:(h + 1) * DH].astype(bf16)               # (B, S, DH)
        ks = qkv3[:, :, H + h * DH:H + (h + 1) * DH].astype(bf16)
        vs = qkv3[:, :, 2 * H + h * DH:2 * H + (h + 1) * DH].astype(bf16)
        sc = jnp.einsum('bqd,bkd->bqk', qs, ks,
                        preferred_element_type=f32)                     # (B, S, S)
        sc = sc * inv_sqrt_dh + mask3
        sc = sc - jnp.max(sc, axis=-1, keepdims=True)
        p = jnp.exp(sc)
        p = p * pl.reciprocal(jnp.sum(p, axis=-1, keepdims=True), approx=True)
        ctx_heads.append(jnp.einsum('bqk,bkd->bqd', p.astype(bf16), vs,
                                    preferred_element_type=f32))
    ctx = jnp.concatenate(ctx_heads, axis=-1).reshape(T, H)             # (T, H)

    attn_out = dense(ctx, wo, lrow(RL_BO, H))
    x = layer_norm(x + attn_out, lrow(RL_LN1G, H), lrow(RL_LN1B, H))

    inter = gelu(dense(x, wi, lrow(RL_BI, I)))
    ffn_out = dense(inter, wo2, lrow(RL_BO2, H))
    x = layer_norm(x + ffn_out, lrow(RL_LN2G, H), lrow(RL_LN2B, H))

    x_ref[...] = x

    # ---- pooler + classifier + weighted CE loss (only after the last layer) ----
    @pl.when(l == pl.num_programs(0) - 1)
    def _():
        xf = x_ref[...]
        cls = xf.reshape(B, S, H)[:, 0, :]                    # (B, H), free reshape + slice
        wp = wpc_ref[:, 0:H]                                  # (H, H) bf16
        wc = wpc_ref[:, H:H + C]                              # (H, C) bf16
        pooled = jnp.tanh(dense(cls, wp, grow(RG_BP, H)))     # (B, H)

        # dropout(p=0.3): identity in eval mode.
        # TODO(synk): training-mode dropout (pltpu.prng_*) not modeled.
        logits = dense(pooled, wc, grow(RG_BC, C))            # (B, C)
        final = jnp.maximum(logits, 0.0)
        out_ref[...] = final

        # weighted CrossEntropyLoss(reduction='mean') on final_layer (as in the PyTorch ref)
        z = final - jnp.max(final, axis=-1, keepdims=True)
        logp = z - jnp.log(jnp.sum(jnp.exp(z), axis=-1, keepdims=True))          # (B, C)
        iota_c = jax.lax.broadcasted_iota(jnp.int32, (B, C), 1)
        onehot = (labels_ref[...] == iota_c).astype(f32)                          # (B, C)
        cw = grow(RG_CW, C)                                                       # (1, C)
        w_per = jnp.sum(onehot * cw, axis=-1, keepdims=True)                      # (B, 1)
        nll = -jnp.sum(onehot * logp, axis=-1, keepdims=True)                     # (B, 1)
        num = jnp.sum(w_per * nll, axis=0, keepdims=True)                         # (1, 1)
        den = jnp.sum(w_per, axis=0, keepdims=True)                               # (1, 1)
        loss_ref[...] = num / den                        # exact divide (review correctness)


# ---------------- parameter initialization (deterministic, synthetic) ----------------
def init_params(key):
    ks = jax.random.split(key, 16)
    n = lambda i, shape: (0.02 * jax.random.normal(ks[i], shape)).astype(jnp.float32)
    ones = lambda shape: jnp.ones(shape, jnp.float32)
    zeros = lambda shape: jnp.zeros(shape, jnp.float32)
    return {
        "word_emb": n(0, (VOCAB, H)),
        "pos_emb": n(1, (S, H)),
        "type_emb": n(2, (2, H)),
        "emb_g": ones((1, H)), "emb_b": zeros((1, H)),
        "wq": n(3, (L, H, H)), "bq": zeros((L, 1, H)),
        "wk": n(4, (L, H, H)), "bk": zeros((L, 1, H)),
        "wv": n(5, (L, H, H)), "bv": zeros((L, 1, H)),
        "wo": n(6, (L, H, H)), "bo": zeros((L, 1, H)),
        "ln1g": ones((L, 1, H)), "ln1b": zeros((L, 1, H)),
        "wi": n(7, (L, I, H)), "bi": zeros((L, 1, I)),
        "wo2": n(8, (L, H, I)), "bo2": zeros((L, 1, H)),
        "ln2g": ones((L, 1, H)), "ln2b": zeros((L, 1, H)),
        "wp": n(9, (H, H)), "bp": zeros((1, H)),
        "wc": n(10, (C, H)), "bc": zeros((1, C)),
        "class_weights": jnp.array(CLASS_WEIGHTS, jnp.float32).reshape(1, C),
    }


def _pad_row(v, width=VEC_W):
    v = jnp.asarray(v, jnp.float32).reshape(1, -1)
    return jnp.pad(v, ((0, 0), (0, width - v.shape[1])))


def pack_params(p):
    """Pack params into a few slabs: (in,out)-layout bf16 weights + 128-lane f32 vec rows."""
    g_rows = [_pad_row(p["emb_g"]), _pad_row(p["emb_b"]), _pad_row(p["bp"]),
              _pad_row(p["bc"]), _pad_row(p["class_weights"])]
    g_rows += [jnp.zeros((1, VEC_W), jnp.float32)] * (G_ROWS - len(g_rows))
    gvec = jnp.concatenate(g_rows, axis=0)                                   # (8, 128)

    lvec_layers, w_in_layers, wo2_layers = [], [], []
    for l in range(L):
        bqkv = jnp.concatenate([p["bq"][l], p["bk"][l], p["bv"][l]], axis=-1)  # (1, 3H)
        rows = [_pad_row(bqkv), _pad_row(p["bo"][l]),
                _pad_row(p["ln1g"][l]), _pad_row(p["ln1b"][l]),
                _pad_row(p["bi"][l]), _pad_row(p["bo2"][l]),
                _pad_row(p["ln2g"][l]), _pad_row(p["ln2b"][l])]
        lvec_layers.append(jnp.concatenate(rows, axis=0))                      # (8, 128)

        # transpose PyTorch (out, in) weights to (in, out) at pack time (free, host-side)
        wqkv_t = jnp.concatenate([p["wq"][l].T, p["wk"][l].T, p["wv"][l].T], axis=1)   # (H, 3H)
        w_in_layers.append(jnp.concatenate([wqkv_t, p["wo"][l].T, p["wi"][l].T],
                                           axis=1))                           # (H, 3H+H+I)
        wo2_layers.append(p["wo2"][l].T)                                       # (I, H)

    lvec = jnp.stack(lvec_layers, axis=0)                                      # (L, 8, 128) f32
    w_in = jnp.stack(w_in_layers, axis=0).astype(jnp.bfloat16)                 # (L, H, 192) bf16
    wo2 = jnp.stack(wo2_layers, axis=0).astype(jnp.bfloat16)                   # (L, I, H)  bf16
    wpc = jnp.concatenate([p["wp"].T, p["wc"].T], axis=1).astype(jnp.bfloat16) # (H, H+C)   bf16
    return gvec, lvec, w_in, wo2, wpc


# ---------------- wrapper ----------------
def bert_classifier_forward(params, input_ids, attention_mask, labels):
    # Embedding gather (glue, plain JAX) — word + position + token_type(=0) embeddings.
    pos_ids = jnp.arange(S, dtype=jnp.int32)
    emb = (params["word_emb"][input_ids]
           + params["pos_emb"][pos_ids][None, :, :]
           + params["type_emb"][0][None, None, :])
    emb = emb.reshape(T, H).astype(jnp.float32)

    maskb = ((1.0 - attention_mask.astype(jnp.float32)) * -10000.0).reshape(B, 1, S)
    labels2 = labels.reshape(B, 1).astype(jnp.int32)

    gvec, lvec, w_in, wo2, wpc = pack_params(params)

    grid_spec = pltpu.PrefetchScalarGridSpec(
        num_scalar_prefetch=0,
        grid=(L,),                                            # one grid step per encoder layer
        in_specs=[
            pl.BlockSpec((T, H), lambda l: (0, 0)),           # embeddings (resident)
            pl.BlockSpec((B, 1, S), lambda l: (0, 0, 0)),     # additive attention mask
            pl.BlockSpec((B, 1), lambda l: (0, 0)),           # labels
            pl.BlockSpec((G_ROWS, VEC_W), lambda l: (0, 0)),  # global bias/LN/class-weight slab
            pl.BlockSpec((H, H + C), lambda l: (0, 0)),       # pooler + classifier weights
            pl.BlockSpec((1, L_ROWS, VEC_W), lambda l: (l, 0, 0)),  # per-layer bias/LN rows
            pl.BlockSpec((1, H, W_IN_COLS), lambda l: (l, 0, 0)),   # per-layer [wqkv|wo|wi]
            pl.BlockSpec((1, I, H), lambda l: (l, 0, 0)),           # per-layer FFN out proj
        ],
        out_specs=(
            pl.BlockSpec((1, 1), lambda l: (0, 0)),           # loss
            pl.BlockSpec((B, C), lambda l: (0, 0)),           # final_layer (ReLU(logits))
        ),
        scratch_shapes=[pltpu.VMEM((T, H), jnp.float32)],     # activations carried across layers
    )

    loss2d, final_layer = pl.pallas_call(
        bert_classifier_kernel,
        out_shape=(jax.ShapeDtypeStruct((1, 1), jnp.float32),
                   jax.ShapeDtypeStruct((B, C), jnp.float32)),
        grid_spec=grid_spec,
        compiler_params=pltpu.CompilerParams(
            dimension_semantics=("arbitrary",),               # layers are sequential
            vmem_limit_bytes=32 * 1024 * 1024),
    )(emb, maskb, labels2, gvec, wpc, lvec, w_in, wo2)
    return loss2d[0, 0], final_layer


if __name__ == "__main__":
    key = jax.random.PRNGKey(0)
    k_ids, k_lab = jax.random.split(key)

    input_ids = jax.random.randint(k_ids, (B, S), 0, VOCAB, dtype=jnp.int32)
    # attention_mask: first sequence fully valid, second padded after 5 tokens
    attention_mask = jnp.array([[1] * S, [1] * 5 + [0] * (S - 5)], dtype=jnp.int32)
    labels = jax.random.randint(k_lab, (B,), 0, C, dtype=jnp.int32)

    params = init_params(jax.random.PRNGKey(42))

    loss, final_layer = bert_classifier_forward(params, input_ids, attention_mask, labels)
    jax.block_until_ready((loss, final_layer))
    print("KERNEL_OK")
</pallas_src>

<mosaic_0001>
module attributes {stable_mosaic.version = 11 : i64} {
  func.func @bert_classifier_kernel(%arg0: i32, %arg1: memref<16x32xf32, #tpu.memory_space<vmem>>, %arg2: memref<2x1x8xf32, #tpu.memory_space<vmem>>, %arg3: memref<2x1xi32, #tpu.memory_space<vmem>>, %arg4: memref<8x128xf32, #tpu.memory_space<vmem>>, %arg5: memref<32x36xbf16, #tpu.memory_space<vmem>>, %arg6: memref<1x8x128xf32, #tpu.memory_space<vmem>>, %arg7: memref<1x32x192xbf16, #tpu.memory_space<vmem>>, %arg8: memref<1x64x32xbf16, #tpu.memory_space<vmem>>, %arg9: memref<1x1xf32, #tpu.memory_space<vmem>>, %arg10: memref<2x4xf32, #tpu.memory_space<vmem>>, %arg11: memref<16x32xf32, #tpu.memory_space<vmem>>) attributes {dimension_semantics = [#tpu.dimension_semantics<arbitrary>], iteration_bounds = array<i64: 2>, scalar_prefetch = 0 : i64, scratch_operands = 1 : i64, tpu.core_type = #tpu.core_type<tc>, window_params = [{pipeline_mode = #tpu.pipeline_mode<synchronous>, transform_indices = @transform_0, window_bounds = array<i64: 16, 32>}, {pipeline_mode = #tpu.pipeline_mode<synchronous>, transform_indices = @transform_1, window_bounds = array<i64: 2, 1, 8>}, {pipeline_mode = #tpu.pipeline_mode<synchronous>, transform_indices = @transform_2, window_bounds = array<i64: 2, 1>}, {pipeline_mode = #tpu.pipeline_mode<synchronous>, transform_indices = @transform_3, window_bounds = array<i64: 8, 128>}, {pipeline_mode = #tpu.pipeline_mode<synchronous>, transform_indices = @transform_4, window_bounds = array<i64: 32, 36>}, {transform_indices = @transform_5, window_bounds = array<i64: 1, 8, 128>}, {transform_indices = @transform_6, window_bounds = array<i64: 1, 32, 192>}, {transform_indices = @transform_7, window_bounds = array<i64: 1, 64, 32>}, {pipeline_mode = #tpu.pipeline_mode<synchronous>, transform_indices = @transform_8, window_bounds = array<i64: 1, 1>}, {pipeline_mode = #tpu.pipeline_mode<synchronous>, transform_indices = @transform_9, window_bounds = array<i64: 2, 4>}]} {
    %c0 = arith.constant 0 : index
    %c0_0 = arith.constant 0 : index
    %0 = vector.load %arg4[%c0, %c0_0] : memref<8x128xf32, #tpu.memory_space<vmem>>, vector<8x128xf32>
    %c0_1 = arith.constant 0 : index
    %c0_2 = arith.constant 0 : index
    %c0_3 = arith.constant 0 : index
    %1 = vector.load %arg6[%c0_1, %c0_2, %c0_3] : memref<1x8x128xf32, #tpu.memory_space<vmem>>, vector<1x8x128xf32>
    %2 = vector.shape_cast %1 : vector<1x8x128xf32> to vector<8x128xf32>
    %c0_i32 = arith.constant 0 : i32
    %3 = arith.cmpi eq, %arg0, %c0_i32 : i32
    %4 = arith.extui %3 : i1 to i32
    %c0_i32_4 = arith.constant 0 : i32
    %5 = arith.cmpi ne, %4, %c0_i32_4 : i32
    scf.if %5 {
      %c0_50 = arith.constant 0 : index
      %c0_51 = arith.constant 0 : index
      %148 = vector.load %arg1[%c0_50, %c0_51] : memref<16x32xf32, #tpu.memory_space<vmem>>, vector<16x32xf32>
      %149 = vector.extract_strided_slice %0 {offsets = [0, 0], sizes = [1, 32], strides = [1, 1]} : vector<8x128xf32> to vector<1x32xf32>
      %150 = vector.extract_strided_slice %0 {offsets = [1, 0], sizes = [1, 32], strides = [1, 1]} : vector<8x128xf32> to vector<1x32xf32>
      %cst_52 = arith.constant dense<0.000000e+00> : vector<16xf32>
      %151 = vector.multi_reduction <add>, %148, %cst_52 [1] : vector<16x32xf32> to vector<16xf32>
      %152 = vector.shape_cast %151 : vector<16xf32> to vector<16x1xf32>
      %cst_53 = arith.constant 3.200000e+01 : f32
      %153 = vector.broadcast %cst_53 : f32 to vector<16x1xf32>
      %154 = arith.divf %152, %153 : vector<16x1xf32>
      %155 = vector.broadcast %154 : vector<16x1xf32> to vector<16x32xf32>
      %156 = arith.subf %148, %155 : vector<16x32xf32>
      %157 = arith.mulf %156, %156 : vector<16x32xf32>
      %cst_54 = arith.constant dense<0.000000e+00> : vector<16xf32>
      %158 = vector.multi_reduction <add>, %157, %cst_54 [1] : vector<16x32xf32> to vector<16xf32>
      %159 = vector.shape_cast %158 : vector<16xf32> to vector<16x1xf32>
      %cst_55 = arith.constant 3.200000e+01 : f32
      %160 = vector.broadcast %cst_55 : f32 to vector<16x1xf32>
      %161 = arith.divf %159, %160 : vector<16x1xf32>
      %cst_56 = arith.constant 9.99999996E-13 : f32
      %162 = vector.broadcast %cst_56 : f32 to vector<16x1xf32>
      %163 = arith.addf %161, %162 : vector<16x1xf32>
      %164 = math.rsqrt %163 : vector<16x1xf32>
      %165 = vector.broadcast %164 : vector<16x1xf32> to vector<16x32xf32>
      %166 = arith.mulf %156, %165 : vector<16x32xf32>
      %167 = vector.broadcast %149 : vector<1x32xf32> to vector<16x32xf32>
      %168 = arith.mulf %166, %167 : vector<16x32xf32>
      %169 = vector.broadcast %150 : vector<1x32xf32> to vector<16x32xf32>
      %170 = arith.addf %168, %169 : vector<16x32xf32>
      %c0_57 = arith.constant 0 : index
      %c0_58 = arith.constant 0 : index
      %171 = vector.load %arg11[%c0_57, %c0_58] : memref<16x32xf32, #tpu.memory_space<vmem>>, vector<16x32xf32>
      tpu.vector_store %arg11[%c0_57, %c0_58], %170 {strides = array<i32>} : memref<16x32xf32, #tpu.memory_space<vmem>>, vector<16x32xf32>,
    } else {
    }
    %c0_5 = arith.constant 0 : index
    %c0_6 = arith.constant 0 : index
    %6 = vector.load %arg11[%c0_5, %c0_6] : memref<16x32xf32, #tpu.memory_space<vmem>>, vector<16x32xf32>
    %c0_7 = arith.constant 0 : index
    %c0_8 = arith.constant 0 : index
    %c0_9 = arith.constant 0 : index
    %7 = vector.load %arg7[%c0_7, %c0_8, %c0_9] : memref<1x32x192xbf16, #tpu.memory_space<vmem>>, vector<1x32x96xbf16>
    %8 = vector.shape_cast %7 : vector<1x32x96xbf16> to vector<32x96xbf16>
    %c0_10 = arith.constant 0 : index
    %c0_11 = arith.constant 0 : index
    %c96 = arith.constant 96 : index
    %9 = vector.load %arg7[%c0_10, %c0_11, %c96] : memref<1x32x192xbf16, #tpu.memory_space<vmem>>, vector<1x32x32xbf16>
    %10 = vector.shape_cast %9 : vector<1x32x32xbf16> to vector<32x32xbf16>
    %c0_12 = arith.constant 0 : index
    %c0_13 = arith.constant 0 : index
    %c128 = arith.constant 128 : index
    %11 = vector.load %arg7[%c0_12, %c0_13, %c128] : memref<1x32x192xbf16, #tpu.memory_space<vmem>>, vector<1x32x64xbf16>
    %12 = vector.shape_cast %11 : vector<1x32x64xbf16> to vector<32x64xbf16>
    %c0_14 = arith.constant 0 : index
    %c0_15 = arith.constant 0 : index
    %c0_16 = arith.constant 0 : index
    %13 = vector.load %arg8[%c0_14, %c0_15, %c0_16] : memref<1x64x32xbf16, #tpu.memory_space<vmem>>, vector<1x64x32xbf16>
    %14 = vector.shape_cast %13 : vector<1x64x32xbf16> to vector<64x32xbf16>
    %15 = vector.extract_strided_slice %2 {offsets = [0, 0], sizes = [1, 96], strides = [1, 1]} : vector<8x128xf32> to vector<1x96xf32>
    %16 = arith.truncf %6 : vector<16x32xf32> to vector<16x32xbf16>
    %cst = arith.constant dense<0.000000e+00> : vector<16x96xf32>
    %17 = tpu.matmul %16, %8, %cst {dimension_numbers = #tpu.dot_dimension_numbers<[1], [0], [0], [1], [0, 0, 1, 1], [], []>} : vector<16x32xbf16>, vector<32x96xbf16>, vector<16x96xf32> -> vector<16x96xf32>
    %18 = vector.broadcast %15 : vector<1x96xf32> to vector<16x96xf32>
    %19 = arith.addf %17, %18 : vector<16x96xf32>
    %20 = vector.shape_cast %19 : vector<16x96xf32> to vector<2x8x96xf32>
    %c0_17 = arith.constant 0 : index
    %c0_18 = arith.constant 0 : index
    %c0_19 = arith.constant 0 : index
    %21 = vector.load %arg2[%c0_17, %c0_18, %c0_19] : memref<2x1x8xf32, #tpu.memory_space<vmem>>, vector<2x1x8xf32>
    %22 = vector.extract_strided_slice %20 {offsets = [0, 0, 0], sizes = [2, 8, 16], strides = [1, 1, 1]} : vector<2x8x96xf32> to vector<2x8x16xf32>
    %23 = arith.truncf %22 : vector<2x8x16xf32> to vector<2x8x16xbf16>
    %24 = vector.extract_strided_slice %20 {offsets = [0, 0, 32], sizes = [2, 8, 16], strides = [1, 1, 1]} : vector<2x8x96xf32> to vector<2x8x16xf32>
    %25 = arith.truncf %24 : vector<2x8x16xf32> to vector<2x8x16xbf16>
    %26 = vector.extract_strided_slice %20 {offsets = [0, 0, 64], sizes = [2, 8, 16], strides = [1, 1, 1]} : vector<2x8x96xf32> to vector<2x8x16xf32>
    %27 = arith.truncf %26 : vector<2x8x16xf32> to vector<2x8x16xbf16>
    "tpu.trace_start"() <{level = 10 : i32, message = "bqd,bkd->bqk"}> : () -> ()
    %cst_20 = arith.constant dense<0.000000e+00> : vector<2x8x8xf32>
    %28 = tpu.matmul %23, %25, %cst_20 {dimension_numbers = #tpu.dot_dimension_numbers<[2], [2], [1], [1], [0, 0, 0, 1, 1, 1], [0], [0]>} : vector<2x8x16xbf16>, vector<2x8x16xbf16>, vector<2x8x8xf32> -> vector<2x8x8xf32>
    "tpu.trace_stop"() : () -> ()
    %cst_21 = arith.constant 2.500000e-01 : f32
    %29 = vector.broadcast %cst_21 : f32 to vector<2x8x8xf32>
    %30 = arith.mulf %28, %29 : vector<2x8x8xf32>
    %31 = vector.broadcast %21 : vector<2x1x8xf32> to vector<2x8x8xf32>
    %32 = arith.addf %30, %31 : vector<2x8x8xf32>
    %cst_22 = arith.constant dense<0xFF800000> : vector<2x8xf32>
    %33 = vector.multi_reduction <maximumf>, %32, %cst_22 [2] : vector<2x8x8xf32> to vector<2x8xf32>
    %34 = vector.shape_cast %33 : vector<2x8xf32> to vector<2x8x1xf32>
    %35 = vector.broadcast %34 : vector<2x8x1xf32> to vector<2x8x8xf32>
    %36 = arith.subf %32, %35 : vector<2x8x8xf32>
    %37 = math.exp %36 : vector<2x8x8xf32>
    %cst_23 = arith.constant dense<0.000000e+00> : vector<2x8xf32>
    %38 = vector.multi_reduction <add>, %37, %cst_23 [2] : vector<2x8x8xf32> to vector<2x8xf32>
    %39 = vector.shape_cast %38 : vector<2x8xf32> to vector<2x8x1xf32>
    %40 = tpu.reciprocal %39 {approx = true} : vector<2x8x1xf32> -> vector<2x8x1xf32>
    %41 = vector.broadcast %40 : vector<2x8x1xf32> to vector<2x8x8xf32>
    %42 = arith.mulf %37, %41 : vector<2x8x8xf32>
    %43 = arith.truncf %42 : vector<2x8x8xf32> to vector<2x8x8xbf16>
    "tpu.trace_start"() <{level = 10 : i32, message = "bqk,bkd->bqd"}> : () -> ()
    %cst_24 = arith.constant dense<0.000000e+00> : vector<2x8x16xf32>
    %44 = tpu.matmul %43, %27, %cst_24 {dimension_numbers = #tpu.dot_dimension_numbers<[2], [1], [1], [2], [0, 0, 0, 1, 1, 2], [0], [0]>} : vector<2x8x8xbf16>, vector<2x8x16xbf16>, vector<2x8x16xf32> -> vector<2x8x16xf32>
    "tpu.trace_stop"() : () -> ()
    %45 = vector.extract_strided_slice %20 {offsets = [0, 0, 16], sizes = [2, 8, 16], strides = [1, 1, 1]} : vector<2x8x96xf32> to vector<2x8x16xf32>
    %46 = arith.truncf %45 : vector<2x8x16xf32> to vector<2x8x16xbf16>
    %47 = vector.extract_strided_slice %20 {offsets = [0, 0, 48], sizes = [2, 8, 16], strides = [1, 1, 1]} : vector<2x8x96xf32> to vector<2x8x16xf32>
    %48 = arith.truncf %47 : vector<2x8x16xf32> to vector<2x8x16xbf16>
    %49 = vector.extract_strided_slice %20 {offsets = [0, 0, 80], sizes = [2, 8, 16], strides = [1, 1, 1]} : vector<2x8x96xf32> to vector<2x8x16xf32>
    %50 = arith.truncf %49 : vector<2x8x16xf32> to vector<2x8x16xbf16>
    "tpu.trace_start"() <{level = 10 : i32, message = "bqd,bkd->bqk"}> : () -> ()
    %cst_25 = arith.constant dense<0.000000e+00> : vector<2x8x8xf32>
    %51 = tpu.matmul %46, %48, %cst_25 {dimension_numbers = #tpu.dot_dimension_numbers<[2], [2], [1], [1], [0, 0, 0, 1, 1, 1], [0], [0]>} : vector<2x8x16xbf16>, vector<2x8x16xbf16>, vector<2x8x8xf32> -> vector<2x8x8xf32>
    "tpu.trace_stop"() : () -> ()
    %cst_26 = arith.constant 2.500000e-01 : f32
    %52 = vector.broadcast %cst_26 : f32 to vector<2x8x8xf32>
    %53 = arith.mulf %51, %52 : vector<2x8x8xf32>
    %54 = vector.broadcast %21 : vector<2x1x8xf32> to vector<2x8x8xf32>
    %55 = arith.addf %53, %54 : vector<2x8x8xf32>
    %cst_27 = arith.constant dense<0xFF800000> : vector<2x8xf32>
    %56 = vector.multi_reduction <maximumf>, %55, %cst_27 [2] : vector<2x8x8xf32> to vector<2x8xf32>
    %57 = vector.shape_cast %56 : vector<2x8xf32> to vector<2x8x1xf32>
    %58 = vector.broadcast %57 : vector<2x8x1xf32> to vector<2x8x8xf32>
    %59 = arith.subf %55, %58 : vector<2x8x8xf32>
    %60 = math.exp %59 : vector<2x8x8xf32>
    %cst_28 = arith.constant dense<0.000000e+00> : vector<2x8xf32>
    %61 = vector.multi_reduction <add>, %60, %cst_28 [2] : vector<2x8x8xf32> to vector<2x8xf32>
    %62 = vector.shape_cast %61 : vector<2x8xf32> to vector<2x8x1xf32>
    %63 = tpu.reciprocal %62 {approx = true} : vector<2x8x1xf32> -> vector<2x8x1xf32>
    %64 = vector.broadcast %63 : vector<2x8x1xf32> to vector<2x8x8xf32>
    %65 = arith.mulf %60, %64 : vector<2x8x8xf32>
    %66 = arith.truncf %65 : vector<2x8x8xf32> to vector<2x8x8xbf16>
    "tpu.trace_start"() <{level = 10 : i32, message = "bqk,bkd->bqd"}> : () -> ()
    %cst_29 = arith.constant dense<0.000000e+00> : vector<2x8x16xf32>
    %67 = tpu.matmul %66, %50, %cst_29 {dimension_numbers = #tpu.dot_dimension_numbers<[2], [1], [1], [2], [0, 0, 0, 1, 1, 2], [0], [0]>} : vector<2x8x8xbf16>, vector<2x8x16xbf16>, vector<2x8x16xf32> -> vector<2x8x16xf32>
    "tpu.trace_stop"() : () -> ()
    %68 = tpu.concatenate %44, %67 in 2 : vector<2x8x16xf32>, vector<2x8x16xf32> -> vector<2x8x32xf32>
    %69 = vector.shape_cast %68 : vector<2x8x32xf32> to vector<16x32xf32>
    %70 = vector.extract_strided_slice %2 {offsets = [1, 0], sizes = [1, 32], strides = [1, 1]} : vector<8x128xf32> to vector<1x32xf32>
    %71 = arith.truncf %69 : vector<16x32xf32> to vector<16x32xbf16>
    %cst_30 = arith.constant dense<0.000000e+00> : vector<16x32xf32>
    %72 = tpu.matmul %71, %10, %cst_30 {dimension_numbers = #tpu.dot_dimension_numbers<[1], [0], [0], [1], [0, 0, 1, 1], [], []>} : vector<16x32xbf16>, vector<32x32xbf16>, vector<16x32xf32> -> vector<16x32xf32>
    %73 = vector.broadcast %70 : vector<1x32xf32> to vector<16x32xf32>
    %74 = arith.addf %72, %73 : vector<16x32xf32>
    %75 = arith.addf %6, %74 : vector<16x32xf32>
    %76 = vector.extract_strided_slice %2 {offsets = [2, 0], sizes = [1, 32], strides = [1, 1]} : vector<8x128xf32> to vector<1x32xf32>
    %77 = vector.extract_strided_slice %2 {offsets = [3, 0], sizes = [1, 32], strides = [1, 1]} : vector<8x128xf32> to vector<1x32xf32>
    %cst_31 = arith.constant dense<0.000000e+00> : vector<16xf32>
    %78 = vector.multi_reduction <add>, %75, %cst_31 [1] : vector<16x32xf32> to vector<16xf32>
    %79 = vector.shape_cast %78 : vector<16xf32> to vector<16x1xf32>
    %cst_32 = arith.constant 3.200000e+01 : f32
    %80 = vector.broadcast %cst_32 : f32 to vector<16x1xf32>
    %81 = arith.divf %79, %80 : vector<16x1xf32>
    %82 = vector.broadcast %81 : vector<16x1xf32> to vector<16x32xf32>
    %83 = arith.subf %75, %82 : vector<16x32xf32>
    %84 = arith.mulf %83, %83 : vector<16x32xf32>
    %cst_33 = arith.constant dense<0.000000e+00> : vector<16xf32>
    %85 = vector.multi_reduction <add>, %84, %cst_33 [1] : vector<16x32xf32> to vector<16xf32>
    %86 = vector.shape_cast %85 : vector<16xf32> to vector<16x1xf32>
    %cst_34 = arith.constant 3.200000e+01 : f32
    %87 = vector.broadcast %cst_34 : f32 to vector<16x1xf32>
    %88 = arith.divf %86, %87 : vector<16x1xf32>
    %cst_35 = arith.constant 9.99999996E-13 : f32
    %89 = vector.broadcast %cst_35 : f32 to vector<16x1xf32>
    %90 = arith.addf %88, %89 : vector<16x1xf32>
    %91 = math.rsqrt %90 : vector<16x1xf32>
    %92 = vector.broadcast %91 : vector<16x1xf32> to vector<16x32xf32>
    %93 = arith.mulf %83, %92 : vector<16x32xf32>
    %94 = vector.broadcast %76 : vector<1x32xf32> to vector<16x32xf32>
    %95 = arith.mulf %93, %94 : vector<16x32xf32>
    %96 = vector.broadcast %77 : vector<1x32xf32> to vector<16x32xf32>
    %97 = arith.addf %95, %96 : vector<16x32xf32>
    %98 = vector.extract_strided_slice %2 {offsets = [4, 0], sizes = [1, 64], strides = [1, 1]} : vector<8x128xf32> to vector<1x64xf32>
    %99 = arith.truncf %97 : vector<16x32xf32> to vector<16x32xbf16>
    %cst_36 = arith.constant dense<0.000000e+00> : vector<16x64xf32>
    %100 = tpu.matmul %99, %12, %cst_36 {dimension_numbers = #tpu.dot_dimension_numbers<[1], [0], [0], [1], [0, 0, 1, 1], [], []>} : vector<16x32xbf16>, vector<32x64xbf16>, vector<16x64xf32> -> vector<16x64xf32>
    %101 = vector.broadcast %98 : vector<1x64xf32> to vector<16x64xf32>
    %102 = arith.addf %100, %101 : vector<16x64xf32>
    %cst_37 = arith.constant 5.000000e-01 : f32
    %103 = vector.broadcast %cst_37 : f32 to vector<16x64xf32>
    %104 = arith.mulf %103, %102 : vector<16x64xf32>
    %cst_38 = arith.constant 4.471500e-02 : f32
    %105 = vector.broadcast %cst_38 : f32 to vector<16x64xf32>
    %106 = arith.mulf %105, %102 : vector<16x64xf32>
    %107 = arith.mulf %106, %102 : vector<16x64xf32>
    %108 = arith.mulf %107, %102 : vector<16x64xf32>
    %109 = arith.addf %102, %108 : vector<16x64xf32>
    %cst_39 = arith.constant 0.797884583 : f32
    %110 = vector.broadcast %cst_39 : f32 to vector<16x64xf32>
    %111 = arith.mulf %110, %109 : vector<16x64xf32>
    %112 = math.tanh %111 : vector<16x64xf32>
    %cst_40 = arith.constant 1.000000e+00 : f32
    %113 = vector.broadcast %cst_40 : f32 to vector<16x64xf32>
    %114 = arith.addf %113, %112 : vector<16x64xf32>
    %115 = arith.mulf %104, %114 : vector<16x64xf32>
    %116 = vector.extract_strided_slice %2 {offsets = [5, 0], sizes = [1, 32], strides = [1, 1]} : vector<8x128xf32> to vector<1x32xf32>
    %117 = arith.truncf %115 : vector<16x64xf32> to vector<16x64xbf16>
    %cst_41 = arith.constant dense<0.000000e+00> : vector<16x32xf32>
    %118 = tpu.matmul %117, %14, %cst_41 {dimension_numbers = #tpu.dot_dimension_numbers<[1], [0], [0], [1], [0, 0, 1, 1], [], []>} : vector<16x64xbf16>, vector<64x32xbf16>, vector<16x32xf32> -> vector<16x32xf32>
    %119 = vector.broadcast %116 : vector<1x32xf32> to vector<16x32xf32>
    %120 = arith.addf %118, %119 : vector<16x32xf32>
    %121 = arith.addf %97, %120 : vector<16x32xf32>
    %122 = vector.extract_strided_slice %2 {offsets = [6, 0], sizes = [1, 32], strides = [1, 1]} : vector<8x128xf32> to vector<1x32xf32>
    %123 = vector.extract_strided_slice %2 {offsets = [7, 0], sizes = [1, 32], strides = [1, 1]} : vector<8x128xf32> to vector<1x32xf32>
    %cst_42 = arith.constant dense<0.000000e+00> : vector<16xf32>
    %124 = vector.multi_reduction <add>, %121, %cst_42 [1] : vector<16x32xf32> to vector<16xf32>
    %125 = vector.shape_cast %124 : vector<16xf32> to vector<16x1xf32>
    %cst_43 = arith.constant 3.200000e+01 : f32
    %126 = vector.broadcast %cst_43 : f32 to vector<16x1xf32>
    %127 = arith.divf %125, %126 : vector<16x1xf32>
    %128 = vector.broadcast %127 : vector<16x1xf32> to vector<16x32xf32>
    %129 = arith.subf %121, %128 : vector<16x32xf32>
    %130 = arith.mulf %129, %129 : vector<16x32xf32>
    %cst_44 = arith.constant dense<0.000000e+00> : vector<16xf32>
    %131 = vector.multi_reduction <add>, %130, %cst_44 [1] : vector<16x32xf32> to vector<16xf32>
    %132 = vector.shape_cast %131 : vector<16xf32> to vector<16x1xf32>
    %cst_45 = arith.constant 3.200000e+01 : f32
    %133 = vector.broadcast %cst_45 : f32 to vector<16x1xf32>
    %134 = arith.divf %132, %133 : vector<16x1xf32>
    %cst_46 = arith.constant 9.99999996E-13 : f32
    %135 = vector.broadcast %cst_46 : f32 to vector<16x1xf32>
    %136 = arith.addf %134, %135 : vector<16x1xf32>
    %137 = math.rsqrt %136 : vector<16x1xf32>
    %138 = vector.broadcast %137 : vector<16x1xf32> to vector<16x32xf32>
    %139 = arith.mulf %129, %138 : vector<16x32xf32>
    %140 = vector.broadcast %122 : vector<1x32xf32> to vector<16x32xf32>
    %141 = arith.mulf %139, %140 : vector<16x32xf32>
    %142 = vector.broadcast %123 : vector<1x32xf32> to vector<16x32xf32>
    %143 = arith.addf %141, %142 : vector<16x32xf32>
    %c0_47 = arith.constant 0 : index
    %c0_48 = arith.constant 0 : index
    %144 = vector.load %arg11[%c0_47, %c0_48] : memref<16x32xf32, #tpu.memory_space<vmem>>, vector<16x32xf32>
    tpu.vector_store %arg11[%c0_47, %c0_48], %143 {strides = array<i32>} : memref<16x32xf32, #tpu.memory_space<vmem>>, vector<16x32xf32>,
    %c1_i32 = arith.constant 1 : i32
    %145 = arith.cmpi eq, %arg0, %c1_i32 : i32
    %146 = arith.extui %145 : i1 to i32
    %c0_i32_49 = arith.constant 0 : i32
    %147 = arith.cmpi ne, %146, %c0_i32_49 : i32
    scf.if %147 {
      %c0_50 = arith.constant 0 : index
      %c0_51 = arith.constant 0 : index
      %148 = vector.load %arg11[%c0_50, %c0_51] : memref<16x32xf32, #tpu.memory_space<vmem>>, vector<16x32xf32>
      %149 = vector.shape_cast %148 : vector<16x32xf32> to vector<2x8x32xf32>
      %150 = vector.extract_strided_slice %149 {offsets = [0, 0, 0], sizes = [2, 1, 32], strides = [1, 1, 1]} : vector<2x8x32xf32> to vector<2x1x32xf32>
      %151 = vector.shape_cast %150 : vector<2x1x32xf32> to vector<2x32xf32>
      %c0_52 = arith.constant 0 : index
      %c0_53 = arith.constant 0 : index
      %152 = vector.load %arg5[%c0_52, %c0_53] : memref<32x36xbf16, #tpu.memory_space<vmem>>, vector<32x32xbf16>
      %c0_54 = arith.constant 0 : index
      %c32 = arith.constant 32 : index
      %153 = vector.load %arg5[%c0_54, %c32] : memref<32x36xbf16, #tpu.memory_space<vmem>>, vector<32x4xbf16>
      %154 = vector.extract_strided_slice %0 {offsets = [2, 0], sizes = [1, 32], strides = [1, 1]} : vector<8x128xf32> to vector<1x32xf32>
      %155 = arith.truncf %151 : vector<2x32xf32> to vector<2x32xbf16>
      %cst_55 = arith.constant dense<0.000000e+00> : vector<2x32xf32>
      %156 = tpu.matmul %155, %152, %cst_55 {dimension_numbers = #tpu.dot_dimension_numbers<[1], [0], [0], [1], [0, 0, 1, 1], [], []>} : vector<2x32xbf16>, vector<32x32xbf16>, vector<2x32xf32> -> vector<2x32xf32>
      %157 = vector.broadcast %154 : vector<1x32xf32> to vector<2x32xf32>
      %158 = arith.addf %156, %157 : vector<2x32xf32>
      %159 = math.tanh %158 : vector<2x32xf32>
      %160 = vector.extract_strided_slice %0 {offsets = [3, 0], sizes = [1, 4], strides = [1, 1]} : vector<8x128xf32> to vector<1x4xf32>
      %161 = arith.truncf %159 : vector<2x32xf32> to vector<2x32xbf16>
      %cst_56 = arith.constant dense<0.000000e+00> : vector<2x4xf32>
      %162 = tpu.matmul %161, %153, %cst_56 {dimension_numbers = #tpu.dot_dimension_numbers<[1], [0], [0], [1], [0, 0, 1, 1], [], []>} : vector<2x32xbf16>, vector<32x4xbf16>, vector<2x4xf32> -> vector<2x4xf32>
      %163 = vector.broadcast %160 : vector<1x4xf32> to vector<2x4xf32>
      %164 = arith.addf %162, %163 : vector<2x4xf32>
      %cst_57 = arith.constant 0.000000e+00 : f32
      %165 = vector.broadcast %cst_57 : f32 to vector<2x4xf32>
      %166 = arith.maximumf %164, %165 : vector<2x4xf32>
      %c0_58 = arith.constant 0 : index
      %c0_59 = arith.constant 0 : index
      %167 = vector.load %arg10[%c0_58, %c0_59] : memref<2x4xf32, #tpu.memory_space<vmem>>, vector<2x4xf32>
      tpu.vector_store %arg10[%c0_58, %c0_59], %166 {strides = array<i32>} : memref<2x4xf32, #tpu.memory_space<vmem>>, vector<2x4xf32>,
      %cst_60 = arith.constant dense<0xFF800000> : vector<2xf32>
      %168 = vector.multi_reduction <maximumf>, %166, %cst_60 [1] : vector<2x4xf32> to vector<2xf32>
      %169 = vector.shape_cast %168 : vector<2xf32> to vector<2x1xf32>
      %170 = vector.broadcast %169 : vector<2x1xf32> to vector<2x4xf32>
      %171 = arith.subf %166, %170 : vector<2x4xf32>
      %172 = math.exp %171 : vector<2x4xf32>
      %cst_61 = arith.constant dense<0.000000e+00> : vector<2xf32>
      %173 = vector.multi_reduction <add>, %172, %cst_61 [1] : vector<2x4xf32> to vector<2xf32>
      %174 = vector.shape_cast %173 : vector<2xf32> to vector<2x1xf32>
      %175 = math.log %174 : vector<2x1xf32>
      %176 = vector.broadcast %175 : vector<2x1xf32> to vector<2x4xf32>
      %177 = arith.subf %171, %176 : vector<2x4xf32>
      %178 = tpu.iota {dimensions = array<i32: 1>} : vector<2x4xi32>
      %c0_62 = arith.constant 0 : index
      %c0_63 = arith.constant 0 : index
      %179 = vector.load %arg3[%c0_62, %c0_63] : memref<2x1xi32, #tpu.memory_space<vmem>>, vector<2x1xi32>
      %180 = vector.broadcast %179 : vector<2x1xi32> to vector<2x4xi32>
      %181 = arith.cmpi eq, %180, %178 : vector<2x4xi32>
      %182 = arith.extui %181 : vector<2x4xi1> to vector<2x4xi32>
      %183 = arith.sitofp %182 : vector<2x4xi32> to vector<2x4xf32>
      %184 = vector.extract_strided_slice %0 {offsets = [4, 0], sizes = [1, 4], strides = [1, 1]} : vector<8x128xf32> to vector<1x4xf32>
      %185 = vector.broadcast %184 : vector<1x4xf32> to vector<2x4xf32>
      %186 = arith.mulf %183, %185 : vector<2x4xf32>
      %cst_64 = arith.constant dense<0.000000e+00> : vector<2xf32>
      %187 = vector.multi_reduction <add>, %186, %cst_64 [1] : vector<2x4xf32> to vector<2xf32>
      %188 = vector.shape_cast %187 : vector<2xf32> to vector<2x1xf32>
      %189 = arith.mulf %183, %177 : vector<2x4xf32>
      %cst_65 = arith.constant dense<0.000000e+00> : vector<2xf32>
      %190 = vector.multi_reduction <add>, %189, %cst_65 [1] : vector<2x4xf32> to vector<2xf32>
      %191 = vector.shape_cast %190 : vector<2xf32> to vector<2x1xf32>
      %cst_66 = arith.constant 0.000000e+00 : f32
      %192 = vector.broadcast %cst_66 : f32 to vector<2x1xf32>
      %193 = arith.subf %192, %191 : vector<2x1xf32>
      %194 = arith.mulf %188, %193 : vector<2x1xf32>
      %cst_67 = arith.constant dense<0.000000e+00> : vector<1xf32>
      %195 = vector.multi_reduction <add>, %194, %cst_67 [0] : vector<2x1xf32> to vector<1xf32>
      %196 = vector.shape_cast %195 : vector<1xf32> to vector<1x1xf32>
      %cst_68 = arith.constant dense<0.000000e+00> : vector<1xf32>
      %197 = vector.multi_reduction <add>, %188, %cst_68 [0] : vector<2x1xf32> to vector<1xf32>
      %198 = vector.shape_cast %197 : vector<1xf32> to vector<1x1xf32>
      %199 = arith.divf %196, %198 : vector<1x1xf32>
      %c0_69 = arith.constant 0 : index
      %c0_70 = arith.constant 0 : index
      %200 = vector.load %arg9[%c0_69, %c0_70] : memref<1x1xf32, #tpu.memory_space<vmem>>, vector<1x1xf32>
      tpu.vector_store %arg9[%c0_69, %c0_70], %199 {strides = array<i32>} : memref<1x1xf32, #tpu.memory_space<vmem>>, vector<1x1xf32>,
    } else {
    }
    return
  }
  func.func @transform_0(%arg0: i32) -> (i32, i32) {
    %c0_i32 = arith.constant 0 : i32
    %c0_i32_0 = arith.constant 0 : i32
    %c0_i32_1 = arith.constant 0 : i32
    return %c0_i32, %c0_i32_0 : i32, i32
  }
  func.func @transform_1(%arg0: i32) -> (i32, i32, i32) {
    %c0_i32 = arith.constant 0 : i32
    %c0_i32_0 = arith.constant 0 : i32
    %c0_i32_1 = arith.constant 0 : i32
    %c0_i32_2 = arith.constant 0 : i32
    return %c0_i32, %c0_i32_0, %c0_i32_1 : i32, i32, i32
  }
  func.func @transform_2(%arg0: i32) -> (i32, i32) {
    %c0_i32 = arith.constant 0 : i32
    %c0_i32_0 = arith.constant 0 : i32
    %c0_i32_1 = arith.constant 0 : i32
    return %c0_i32, %c0_i32_0 : i32, i32
  }
  func.func @transform_3(%arg0: i32) -> (i32, i32) {
    %c0_i32 = arith.constant 0 : i32
    %c0_i32_0 = arith.constant 0 : i32
    %c0_i32_1 = arith.constant 0 : i32
    return %c0_i32, %c0_i32_0 : i32, i32
  }
  func.func @transform_4(%arg0: i32) -> (i32, i32) {
    %c0_i32 = arith.constant 0 : i32
    %c0_i32_0 = arith.constant 0 : i32
    %c0_i32_1 = arith.constant 0 : i32
    return %c0_i32, %c0_i32_0 : i32, i32
  }
  func.func @transform_5(%arg0: i32) -> (i32, i32, i32) {
    %c0_i32 = arith.constant 0 : i32
    %c0_i32_0 = arith.constant 0 : i32
    %c0_i32_1 = arith.constant 0 : i32
    return %arg0, %c0_i32, %c0_i32_0 : i32, i32, i32
  }
  func.func @transform_6(%arg0: i32) -> (i32, i32, i32) {
    %c0_i32 = arith.constant 0 : i32
    %c0_i32_0 = arith.constant 0 : i32
    %c0_i32_1 = arith.constant 0 : i32
    return %arg0, %c0_i32, %c0_i32_0 : i32, i32, i32
  }
  func.func @transform_7(%arg0: i32) -> (i32, i32, i32) {
    %c0_i32 = arith.constant 0 : i32
    %c0_i32_0 = arith.constant 0 : i32
    %c0_i32_1 = arith.constant 0 : i32
    return %arg0, %c0_i32, %c0_i32_0 : i32, i32, i32
  }
  func.func @transform_8(%arg0: i32) -> (i32, i32) {
    %c0_i32 = arith.constant 0 : i32
    %c0_i32_0 = arith.constant 0 : i32
    %c0_i32_1 = arith.constant 0 : i32
    return %c0_i32, %c0_i32_0 : i32, i32
  }
  func.func @transform_9(%arg0: i32) -> (i32, i32) {
    %c0_i32 = arith.constant 0 : i32
    %c0_i32_0 = arith.constant 0 : i32
    %c0_i32_1 = arith.constant 0 : i32
    return %c0_i32, %c0_i32_0 : i32, i32
  }
}

</mosaic_0001>

<bundles_post_ra>
// kernel: tpu_custom_call.1
= control target key start
LH: loop header
LB: loop body
LE: loop exit
PB: predicated region body
PF: predicated region fallthrough
CT: control target
= control target key end

     0   :  { %15 = vsyncpa [#allocation4], 0  ;;  %s2236_s0 = inlined_call_operand.vmem [shape: f32[16,32], index: 0, kind: input, shape index: {}]   ;;  %s2237_s1 = inlined_call_operand.vmem [shape: f32[2,1,8], index: 1, kind: input, shape index: {}]   ;;  %s2238_s2 = inlined_call_operand.vmem [shape: s32[2,1], index: 2, kind: input, shape index: {}]   ;;  %s2239_s3 = inlined_call_operand.vmem [shape: f32[8,128], index: 3, kind: input, shape index: {}]   ;;  %s2240_s4 = inlined_call_operand.vmem [shape: bf16[32,36], index: 4, kind: input, shape index: {}]   ;;  %s2241_s5 = inlined_call_operand.vmem [shape: f32[2,8,128], index: 5, kind: input, shape index: {}]   ;;  %s2242_s6 = inlined_call_operand.vmem [shape: bf16[2,32,192], index: 6, kind: input, shape index: {}]   ;;  %s2243_s7 = inlined_call_operand.vmem [shape: bf16[2,64,32], index: 7, kind: input, shape index: {}]   ;;  %s2244_s8 = inlined_call_operand.hbm [shape: f32[1,1], index: 8, kind: output, shape index: {0}]   ;;  %s2245_s9 = inlined_call_operand.hbm [shape: f32[2,4], index: 9, kind: output, shape index: {1}]  }
   0x1   :  { %16 = vsyncpa [#allocation6], 0  ;;  %s1941_s30 = smov 0  }
   0x2 LB: > { %s1947_s10 = sadd.s32 4294967295, %s1874_s30   ;;  %p1538_p0 = scmp.ge.s32.totalorder %s1874_s30, 1  ;;  %s1874_s30 = sphi %s1941_s30, %s22_s30  }
   0x3   : > { %p301_p1 = scmp.lt.s32.totalorder %s1874_s30, 3 }
   0x5   : > { %p302_p2 = pnand %p1538_p0, %p301_p1 }
   0x6   : > { %p341_p3 = scmp.lt.s32.totalorder (!%p302_p2), %s1947_s10, 1  ;;  %v1955_v0 = vld [vmem:[%s2239_s3] sm:$0xff] (!%p302_p2)  ;;  %p1544_p4 = scmp.ne.s32.totalorder (!%p302_p2), %s1947_s10, 0 }
   0x7   : > { %305 = sbr.rel (%p302_p2) target bundleno = 4389 (0x1125), region = 52 }
   0xe   : > { %s342_s13 = scalar_select %p341_p3, %s1947_s10, 1 }
   0xf   : > { %361 = sbr.rel (%p1544_p4) target bundleno = 334 (0x14e), region = 56  ;;  %v362_v2 = vld [vmem:[%s2236_s0] sm:$0xff] (!%p1544_p4)  ;;  %vm364_vm0 = vcmask (!%p1544_p4), 261120   ;;  %v363_v3 = vld [vmem:[%s2236_s0 + $0x8] sm:$0xff] (!%p1544_p4)  ;;  %v392_v18 = vlaneseq (!%p1544_p4) }
  0x10   : > { %s1539_s14 = sshll.u32 %s342_s13, 3  ;;  %s1579_s15 = sshll.u32 %s342_s13, 5  ;;  %v365_v4 = vsel (!%p1544_p4), %vm364_vm0, %v362_v2, 0.0  ;;  %v368_v5 = vsel (!%p1544_p4), %vm364_vm0, %v363_v3, 0.0 }
  0x11   : > { %s344_s18 = scalar_lea.vmem %s2241_s5, %s1539_s14  ;;  %s1964_s21 = scalar_lea.vmem %s2242_s6, %s1579_s15  ;;  %366 = vadd.xlane.f32.xlu0 (!%p1544_p4), %v365_v4  ;;  %v393_v22 = vshrl.u32 (!%p1544_p4), %v392_v18, 7 }
  0x12   : > { %s1969_s24 = scalar_lea.vmem %s2243_s7, %s1579_s15  ;;  %v1971_v1 = vld [vmem:[%s344_s18] sm:$0xff] }
  0x13   : > { %v394_v24 = vsub.s32 (!%p1544_p4), 0, %v393_v22  ;;  %v400_v25 = vsub.s32 (!%p1544_p4), 1, %v393_v22 }
  0x15   : > { %369 = vadd.xlane.f32.xlu0 (!%p1544_p4), %v368_v5  ;;  %v395_v26 = vrot.slane (!%p1544_p4), %v1955_v0, %v394_v24  ;;  %v401_v28 = vrot.slane (!%p1544_p4), %v1955_v0, %v400_v25 }
  0x9e   : > { %v367_v6 = vpop.xlane.xlu0 %366 }
  0x9f   : > { %v372_v7 = vmul.f32 0.03125, %v367_v6 }
  0xa1   : > { %v374_v8 = vsub.f32 %v362_v2, %v372_v7 }
  0xa2   : > { %v370_v9 = vpop.xlane.xlu0 %369 }
  0xa3   : > { %v373_v10 = vmul.f32 0.03125, %v370_v9  ;;  %v376_v11 = vmul.f32 %v374_v8, %v374_v8 }
  0xa5   : > { %v375_v12 = vsub.f32 %v363_v3, %v373_v10  ;;  %v378_v13 = vsel %vm364_vm0, %v376_v11, 0.0 }
  0xa6   : > { %379 = vadd.xlane.f32.xlu1 %v378_v13 }
  0xa7   : > { %v377_v14 = vmul.f32 %v375_v12, %v375_v12 }
  0xa9   : > { %v381_v15 = vsel %vm364_vm0, %v377_v14, 0.0 }
  0xaa   : > { %382 = vadd.xlane.f32.xlu1 %v381_v15 }
 0x133   : > { %v380_v16 = vpop.xlane.xlu1 %379 }
 0x134   : > { %v384_v17 = vmul.f32 0.03125, %v380_v16 }
 0x136   : > { %v386_v19 = vadd.f32 1e-12, %v384_v17 }
 0x137   : > { %v383_v20 = vpop.xlane.xlu1 %382 }
 0x138   : > { %1752 = vrsqrt.f32 %v386_v19  ;;  %v385_v21 = vmul.f32 0.03125, %v383_v20 }
 0x13a   : > { %v387_v23 = vadd.f32 1e-12, %v385_v21 }
 0x13c   : > { %1754 = vrsqrt.f32 %v387_v23 }
 0x142   : > { %v1753_v27 = vpop.eup %1752 }
 0x143   : > { %v390_v29 = vmul.f32 %v1753_v27, %v374_v8 }
 0x145   : > { %v396_v30 = vmul.f32 %v395_v26, %v390_v29 }
 0x146   : > { %v1755_v31 = vpop.eup %1754 }
 0x147   : > { %v402_v32 = vadd.f32 %v401_v28, %v396_v30  ;;  %v391_v33 = vmul.f32 %v1755_v31, %v375_v12 }
 0x149   : > { %404 = vst.msk [vmem:[#allocation2] sm:$0xff] %vm364_vm0, %v402_v32  ;;  %v397_v34 = vmul.f32 %v395_v26, %v391_v33 }
 0x14b   : > { %v403_v35 = vadd.f32 %v401_v28, %v397_v34 }
 0x14d   : > { %405 = vst.msk [vmem:[#allocation2 + $0x8] sm:$0xff] %vm364_vm0, %v403_v35 }
 0x14e PF: > { %v1876_v36 = vmov 0.0   ;;  %v1990_v37 = vld [vmem:[%s1964_s21] ss:$8 sps:$4 sm:$0xff]   ;;  %vm1877_vm1 = vmmov 0   ;;  %v1995_v38 = vld [vmem:[%s1964_s21 + $0x10] ss:$8 sps:$4 sm:$0xff]   ;;  %v425_v42 = vlaneseq }
 0x14f   : > { %1617 = vmatprep.subr.bf16.mxu0 %v1876_v36  ;;  %1621 = vmatprep.mubr.msk.bf16.mxu0 %vm1877_vm1, %v1876_v36  ;;  %vm441_vm2 = vcmask 261120   ;;  %s1878_s29 = smov 96   ;;  %vm493_vm3 = vcmask 130048   ;;  %v2039_v59 = vld [vmem:[%s2237_s1] ss:$0 sm:$0xff]  ;;  %vm605_vm4 = vcmask 64512  }
 0x150   : > { %v1997_v39 = vld [vmem:[#allocation2] sm:$0xff]  ;;  %1625 = vmatprep.subr.bf16.mxu1 %v1876_v36  ;;  %1627 = vmatprep.mubr.msk.bf16.mxu1 %vm1877_vm1, %v1876_v36  ;;  %v2014_v43 = vshrl.u32 %v425_v42, 7  ;;  %s1879_s15 = smov 64   ;;  %s1880_s16 = smov 80   ;;  %vm635_vm5 = vcmask 1043456   ;;  %vm1165_vm6 = vcmask 523264  }
 0x151   : > { %1618 = vmatpush3.bf16.msra.mxu0 %v1990_v37  ;;  %v2045_v4 = vld [vmem:[%s2237_s1 + $0x1] ss:$0 sm:$0xff]  ;;  %s1881_s17 = smov 112   ;;  %s1882_s18 = smov 48  }
 0x152   : > { %1619 = vmatprep.subr.bf16.mxu0 %v1876_v36  ;;  %v427_v44 = vsub.s32 0, %v2014_v43  ;;  %s1883_s19 = smov 32   ;;  %s1884_s20 = smov 16  }
 0x153   : > { %p1567_p5 = scmp.ne.s32.totalorder %s1947_s10, 1 }
 0x154   : > { %v1999_v40 = vld [vmem:[#allocation2 + $0x8] sm:$0xff]  ;;  %v428_v45 = vrot.slane %v1971_v1, %v427_v44  ;;  %vm1886_vm7 = vmmov (!%p1567_p5), 0   ;;  %s1887_s25 = smov (!%p1567_p5), 96   ;;  %vm1273_vm8 = vcmask (!%p1567_p5), 1041409   ;;  %vm1387_vm9 = vcmask (!%p1567_p5), 25600  }
 0x155   : > { %v424_v41 = vpack.c.bf16 %v1999_v40, %v1997_v39  ;;  %1620 = vmatpush3.bf16.msra.mxu0 %v1995_v38  ;;  %vm1424_vm11 = vcmask (!%p1567_p5), 1041408   ;;  %vm1441_vm12 = vcmask (!%p1567_p5), 0  }
 0x156   : > { %1631 = vmatprep.subr.bf16.mxu0 %v1876_v36 }
 0x158   : > { %1622 = vmatmul.mubr.msk.bf16.vlgmr.msra.gmra.mrb[0].mxu0 %vm441_vm2, %v424_v41 }
 0x159   : > { %1633 = vmatprep.mubr.msk.bf16.mxu0 %vm1877_vm1, %v1876_v36 }
 0x22b   : > { %v479_v46 = vpop.f32.mrb[0].mxu0 }
 0x22c   : > { %v480_v47 = vadd.f32 %v479_v46, %v428_v45  ;;  %v1623_v48 = vpop.f32.mrb[1].mxu0 }
 0x22d   : > { %v482_v49 = vpop.f32.mrb[2].mxu0 }
 0x22e   : > { %v2018_v50 = vpack.c.bf16 %v480_v47, %v480_v47  ;;  %v483_v51 = vadd.f32 %v482_v49, %v428_v45  ;;  %v1624_v52 = vpop.f32.mrb[3].mxu0 }
 0x230   : > { %491 = vrot.lane.b32.xlu0 %v2018_v50, %s1878_s29  ;;  %v2021_v53 = vpack.c.bf16 %v483_v51, %v483_v51 }
 0x234   : > { %541 = vrot.lane.b32.xlu0 %v2021_v53, %s1878_s29 }
 0x2a2   : > { %v492_v54 = vpop.permute.xlu0 %491 }
 0x2a3   : > { %v498_v55 = vsel %vm493_vm3, %v492_v54, 0 }
 0x2a4   : > { %1626 = vmatpush3.bf16.xpose.msra.mxu1 %v498_v55 }
 0x2a5   : > { %1637 = vmatprep.subr.bf16.mxu1 %v1876_v36 }
 0x2a6   : > { %v542_v56 = vpop.permute.xlu0 %541 }
 0x2a7   : > { %v547_v57 = vsel %vm493_vm3, %v542_v56, 0 }
 0x2a8   : > { %1632 = vmatpush3.bf16.xpose.msra.mxu0 %v547_v57 }
 0x2a9   : > { %1643 = vmatprep.subr.bf16.mxu0 %v1876_v36 }
 0x2ab   : > { %1628 = vmatmul.mubr.msk.bf16.vlgmr.msra.gmra.mrb[0].mxu1 %vm493_vm3, %v2018_v50 }
 0x2ac   : > { %1639 = vmatprep.mubr.msk.bf16.mxu1 %vm1877_vm1, %v1876_v36 }
 0x2af   : > { %1634 = vmatmul.mubr.msk.bf16.vlgmr.msra.gmra.mrb[4].mxu0 %vm493_vm3, %v2021_v53 }
 0x2b0   : > { %1645 = vmatprep.mubr.msk.bf16.mxu0 %vm1877_vm1, %v1876_v36 }
 0x37e   : > { %v534_v58 = vpop.f32.mrb[0].mxu1 }
 0x37f   : > { %v589_v60 = vmul.f32 0.25, %v534_v58  ;;  %v1629_v61 = vpop.f32.mrb[1].mxu1 }
 0x380   : > { %v537_v62 = vpop.f32.mrb[2].mxu1 }
 0x381   : > { %v1630_v63 = vpop.f32.mrb[3].mxu1  ;;  %v603_v2 = vadd.f32 %v2039_v59, %v589_v60 }
 0x382   : > { %v583_v3 = vpop.f32.mrb[4].mxu0 }
 0x383   : > { %v590_v5 = vmul.f32 0.25, %v583_v3  ;;  %v1635_v6 = vpop.f32.mrb[5].mxu0  ;;  %v606_v7 = vsel %vm605_vm4, %v603_v2, -inf }
 0x384   : > { %607 = vmax.xlane.f32.xlu1 %v606_v7  ;;  %v586_v8 = vpop.f32.mrb[6].mxu0 }
 0x385   : > { %v1636_v9 = vpop.f32.mrb[7].mxu0  ;;  %v604_v10 = vadd.f32 %v2045_v4, %v590_v5 }
 0x387   : > { %v609_v11 = vsel %vm605_vm4, %v604_v10, -inf }
 0x388   : > { %610 = vmax.xlane.f32.xlu1 %v609_v11 }
 0x399   : > { %630 = vrot.lane.b32.xlu1 %v2018_v50, %s1879_s15 }
 0x39d   : > { %679 = vrot.lane.b32.xlu1 %v2021_v53, %s1879_s15 }
 0x3a1   : > { %729 = vrot.lane.b32.xlu1 %v2018_v50, %s1880_s16 }
 0x411   : > { %v608_v12 = vpop.xlane.xlu1 %607 }
 0x412   : > { %v612_v13 = vsub.f32 %v603_v2, %v608_v12 }
 0x414   : > { %v614_v14 = vmul.f32 1.442695, %v612_v13 }
 0x415   : > { %v611_v15 = vpop.xlane.xlu1 %610 }
 0x416   : > { %1769 = vpow2.f32 %v614_v14  ;;  %v613_v16 = vsub.f32 %v604_v10, %v611_v15 }
 0x418   : > { %v616_v17 = vmul.f32 1.442695, %v613_v16 }
 0x419   : > { %v631_v18 = vpop.permute.xlu1 %630 }
 0x41a   : > { %1771 = vpow2.f32 %v616_v17  ;;  %v637_v19 = vsel %vm635_vm5, %v631_v18, 0 }
 0x41b   : > { %1638 = vmatpush3.bf16.msra.mxu1 %v637_v19 }
 0x41c   : > { %1649 = vmatprep.subr.bf16.mxu1 %v1876_v36 }
 0x41d   : > { %v680_v20 = vpop.permute.xlu1 %679 }
 0x41e   : > { %v685_v21 = vsel %vm635_vm5, %v680_v20, 0 }
 0x41f   : > { %1644 = vmatpush3.bf16.msra.mxu0 %v685_v21 }
 0x420   : > { %v1770_v22 = vpop.eup %1769  ;;  %1655 = vmatprep.subr.bf16.mxu0 %v1876_v36 }
 0x421   : > { %v618_v23 = vsel %vm605_vm4, %v1770_v22, 0.0  ;;  %v730_v26 = vpop.permute.xlu1 %729 }
 0x422   : > { %619 = vadd.xlane.f32.xlu0 %v618_v23  ;;  %v735_v33 = vsel %vm493_vm3, %v730_v26, 0 }
 0x424   : > { %v1772_v24 = vpop.eup %1771 }
 0x425   : > { %v621_v25 = vsel %vm605_vm4, %v1772_v24, 0.0 }
 0x426   : > { %622 = vadd.xlane.f32.xlu1 %v621_v25 }
 0x437   : > { %779 = vrot.lane.b32.xlu1 %v2021_v53, %s1880_s16 }
 0x438   : > { %727 = vrot.lane.b32.xlu0 %v2018_v50, %s1881_s17 }
 0x43b   : > { %777 = vrot.lane.b32.xlu1 %v2021_v53, %s1881_s17 }
 0x4af   : > { %v620_v27 = vpop.xlane.xlu0 %619 }
 0x4b0   : > { %1773 = vrcp.f32 %v620_v27 }
 0x4b3   : > { %v623_v28 = vpop.xlane.xlu1 %622  ;;  %v728_v45 = vpop.permute.xlu0 %727 }
 0x4b4   : > { %1775 = vrcp.f32 %v623_v28 }
 0x4b7   : > { %v780_v35 = vpop.permute.xlu1 %779 }
 0x4b8   : > { %v785_v44 = vsel %vm493_vm3, %v780_v35, 0 }
 0x4ba   : > { %v1774_v29 = vpop.eup %1773 }
 0x4bb   : > { %v626_v30 = vmul.f32 %v1774_v29, %v1770_v22  ;;  %v778_v46 = vpop.permute.xlu1 %777 }
 0x4bd   : > { %v628_v31 = vpack.c.bf16 %v626_v30, %v626_v30 }
 0x4be   : > { %v1776_v32 = vpop.eup %1775 }
 0x4bf   : > { %v627_v34 = vmul.f32 %v1776_v32, %v1772_v24  ;;  %1640 = vmatmul.mubr.msk.bf16.vlgmr.msra.gmra.mrb[4].mxu1 %vm605_vm4, %v628_v31 }
 0x4c0   : > { %1650 = vmatpush3.bf16.xpose.msra.mxu1 %v735_v33  ;;  %1651 = vmatprep.mubr.msk.bf16.mxu1 %vm1877_vm1, %v1876_v36 }
 0x4c1   : > { %v629_v41 = vpack.c.bf16 %v627_v34, %v627_v34  ;;  %1661 = vmatprep.subr.bf16.mxu1 %v1876_v36 }
 0x4c3   : > { %1646 = vmatmul.mubr.msk.bf16.vlgmr.msra.gmra.mrb[8].mxu0 %vm605_vm4, %v629_v41 }
 0x4c4   : > { %1656 = vmatpush3.bf16.xpose.msra.mxu0 %v785_v44  ;;  %1657 = vmatprep.mubr.msk.bf16.mxu0 %vm1877_vm1, %v1876_v36 }
 0x4c5   : > { %1667 = vmatprep.subr.bf16.mxu0 %v1876_v36 }
 0x4c7   : > { %1652 = vmatmul.mubr.msk.bf16.vlgmr.msra.gmra.mrb[8].mxu1 %vm493_vm3, %v728_v45 }
 0x4c8   : > { %1663 = vmatprep.mubr.msk.bf16.mxu1 %vm1877_vm1, %v1876_v36 }
 0x4cb   : > { %1658 = vmatmul.mubr.msk.bf16.vlgmr.msra.gmra.mrb[12].mxu0 %vm493_vm3, %v778_v46 }
 0x4cc   : > { %1669 = vmatprep.mubr.msk.bf16.mxu0 %vm1877_vm1, %v1876_v36 }
 0x592   : > { %v2078_v47 = vpop.f32.mrb[4].mxu1 }
 0x593   : > { %v1641_v48 = vpop.f32.mrb[5].mxu1 }
 0x594   : > { %v676_v49 = vpop.f32.mrb[6].mxu1 }
 0x595   : > { %v1642_v51 = vpop.f32.mrb[7].mxu1 }
 0x596   : > { %v2080_v52 = vpop.f32.mrb[8].mxu0 }
 0x597   : > { %v1647_v54 = vpop.f32.mrb[9].mxu0 }
 0x598   : > { %v724_v55 = vpop.f32.mrb[10].mxu0 }
 0x599   : > { %v1648_v56 = vpop.f32.mrb[11].mxu0  ;;  %v964_v55 = vsub.s32 1, %v2014_v43 }
 0x59a   : > { %v771_v57 = vpop.f32.mrb[8].mxu1 }
 0x59b   : > { %v827_v58 = vmul.f32 0.25, %v771_v57  ;;  %v1653_v60 = vpop.f32.mrb[9].mxu1  ;;  %v965_v56 = vrot.slane %v1971_v1, %v964_v55 }
 0x59c   : > { %v774_v61 = vpop.f32.mrb[10].mxu1 }
 0x59d   : > { %v1654_v62 = vpop.f32.mrb[11].mxu1  ;;  %v829_v63 = vadd.f32 %v2039_v59, %v827_v58 }
 0x59e   : > { %v821_v2 = vpop.f32.mrb[12].mxu0 }
 0x59f   : > { %v828_v3 = vmul.f32 0.25, %v821_v2  ;;  %v1659_v5 = vpop.f32.mrb[13].mxu0  ;;  %v831_v6 = vsel %vm605_vm4, %v829_v63, -inf }
 0x5a0   : > { %832 = vmax.xlane.f32.xlu1 %v831_v6  ;;  %v824_v7 = vpop.f32.mrb[14].mxu0 }
 0x5a1   : > { %v1660_v8 = vpop.f32.mrb[15].mxu0  ;;  %v830_v9 = vadd.f32 %v2045_v4, %v828_v3 }
 0x5a3   : > { %v834_v10 = vsel %vm605_vm4, %v830_v9, -inf }
 0x5a4   : > { %835 = vmax.xlane.f32.xlu0 %v834_v10 }
 0x5ba   : > { %903 = vrot.lane.b32.xlu0 %v2021_v53, %s1882_s18 }
 0x5be   : > { %968 = vrot.lane.b32.xlu0 %v1995_v38, %s1883_s19 }
 0x62d   : > { %v833_v11 = vpop.xlane.xlu1 %832 }
 0x62e   : > { %v837_v12 = vsub.f32 %v829_v63, %v833_v11 }
 0x630   : > { %v839_v13 = vmul.f32 1.442695, %v837_v12 }
 0x631   : > { %v836_v59 = vpop.xlane.xlu0 %835 }
 0x632   : > { %1777 = vpow2.f32 %v839_v13  ;;  %v838_v14 = vsub.f32 %v830_v9, %v836_v59  ;;  %v1764_v59 = vld [vmem:[%s1964_s21 + $0x14] ss:$8 sps:$4 sm:$0xff]  }
 0x634   : > { %v841_v15 = vmul.f32 1.442695, %v838_v14 }
 0x635   : > { %v904_v16 = vpop.permute.xlu0 %903 }
 0x636   : > { %1779 = vpow2.f32 %v841_v15  ;;  %v909_v17 = vsel %vm635_vm5, %v904_v16, 0 }
 0x637   : > { %1668 = vmatpush3.bf16.msra.mxu0 %v909_v17 }
 0x638   : > { %1681 = vmatprep.subr.bf16.mxu0 %v1876_v36 }
 0x639   : > { %v969_v30 = vpop.permute.xlu0 %968 }
 0x63c   : > { %v1778_v4 = vpop.eup %1777 }
 0x63d   : > { %v843_v18 = vsel %vm605_vm4, %v1778_v4, 0.0 }
 0x63e   : > { %844 = vadd.xlane.f32.xlu1 %v843_v18 }
 0x640   : > { %v1780_v19 = vpop.eup %1779 }
 0x641   : > { %v846_v53 = vsel %vm605_vm4, %v1780_v19, 0.0 }
 0x642   : > { %847 = vadd.xlane.f32.xlu1 %v846_v53 }
 0x653   : > { %855 = vrot.lane.b32.xlu1 %v2018_v50, %s1882_s18 }
 0x657   : > { %966 = vrot.lane.b32.xlu1 %v1990_v37, %s1883_s19 }
 0x6cb   : > { %v845_v20 = vpop.xlane.xlu1 %844 }
 0x6cc   : > { %1781 = vrcp.f32 %v845_v20  ;;  %v1053_v20 = vsub.s32 3, %v2014_v43 }
 0x6cf   : > { %v848_v21 = vpop.xlane.xlu1 %847 }
 0x6d0   : > { %1783 = vrcp.f32 %v848_v21 }
 0x6d3   : > { %v856_v22 = vpop.permute.xlu1 %855 }
 0x6d4   : > { %v861_v23 = vsel %vm635_vm5, %v856_v22, 0 }
 0x6d5   : > { %1662 = vmatpush3.bf16.msra.mxu1 %v861_v23 }
 0x6d6   : > { %v1782_v24 = vpop.eup %1781  ;;  %1673 = vmatprep.subr.bf16.mxu1 %v1876_v36 }
 0x6d7   : > { %v851_v25 = vmul.f32 %v1782_v24, %v1778_v4  ;;  %v967_v29 = vpop.permute.xlu1 %966 }
 0x6d9   : > { %v853_v26 = vpack.c.bf16 %v851_v25, %v851_v25 }
 0x6da   : > { %v1784_v27 = vpop.eup %1783 }
 0x6db   : > { %v852_v28 = vmul.f32 %v1784_v27, %v1780_v19  ;;  %1664 = vmatmul.mubr.msk.bf16.vlgmr.msra.gmra.mrb[12].mxu1 %vm605_vm4, %v853_v26  ;;  %v1047_v19 = vsub.s32 2, %v2014_v43  ;;  %v1054_v26 = vrot.slane %v1971_v1, %v1053_v20 }
 0x6dc   : > { %1677 = vmatprep.mubr.msk.bf16.mxu1 %vm1877_vm1, %v1876_v36  ;;  %1674 = vmatpush3.bf16.msra.mxu1 %v967_v29 }
 0x6dd   : > { %v854_v50 = vpack.c.bf16 %v852_v28, %v852_v28  ;;  %1675 = vmatprep.subr.bf16.mxu1 %v1876_v36  ;;  %v1048_v53 = vrot.slane %v1971_v1, %v1047_v19 }
 0x6df   : > { %1670 = vmatmul.mubr.msk.bf16.vlgmr.msra.gmra.mrb[16].mxu0 %vm605_vm4, %v854_v50 }
 0x6e0   : > { %1685 = vmatprep.mubr.msk.bf16.mxu0 %vm1877_vm1, %v1876_v36  ;;  %1676 = vmatpush3.bf16.msra.mxu1 %v969_v30  ;;  %v1765_v30 = vld [vmem:[%s1969_s24] sm:$0xff]  }
 0x6e1   : > { %1689 = vmatprep.subr.bf16.mxu1 %v1876_v36 }
 0x7ae   : > { %v897_v31 = vpop.f32.mrb[12].mxu1 }
 0x7af   : > { %v1665_v32 = vpop.f32.mrb[13].mxu1 }
 0x7b0   : > { %v900_v33 = vpop.f32.mrb[14].mxu1  ;;  %v1767_v32 = vld [vmem:[%s1969_s24 + $0x10] sm:$0xff]  }
 0x7b1   : > { %v1666_v34 = vpop.f32.mrb[15].mxu1  ;;  %v1768_v33 = vld [vmem:[%s1969_s24 + $0x18] sm:$0xff]  }
 0x7b2   : > { %v945_v35 = vpop.f32.mrb[16].mxu0  ;;  %v1060_v34 = vsub.s32 4, %v2014_v43 }
 0x7b3   : > { %v1756_v41 = vpack.i.bf16 %v945_v35, %v897_v31  ;;  %v1671_v44 = vpop.f32.mrb[17].mxu0  ;;  %v1766_v31 = vld [vmem:[%s1969_s24 + $0x8] sm:$0xff]  }
 0x7b4   : > { %v948_v45 = vpop.f32.mrb[18].mxu0  ;;  %v1061_v35 = vrot.slane %v1971_v1, %v1060_v34 }
 0x7b5   : > { %1757 = vrot.lane.b32.xlu1 %v1756_v41, %s1884_s20  ;;  %v1672_v37 = vpop.f32.mrb[19].mxu0 }
 0x827   : > { %v1758_v38 = vpop.permute.xlu1 %1757 }
 0x828   : > { %v1760_v46 = vunpack.i.h.bf16 %v1758_v38  ;;  %v1759_v48 = vunpack.i.l.bf16 %v1758_v38 }
 0x82a   : > { %v960_v49 = vsel %vm493_vm3, %v2080_v52, %v1760_v46  ;;  %v959_v51 = vsel %vm493_vm3, %v2078_v47, %v1759_v48 }
 0x82b   : > { %v961_v54 = vpack.c.bf16 %v960_v49, %v959_v51 }
 0x82d   : > { %1678 = vmatmul.mubr.msk.bf16.vlgmr.msra.gmra.mrb[16].mxu1 %vm441_vm2, %v961_v54 }
 0x82e   : > { %1697 = vmatprep.mubr.msk.bf16.mxu1 %vm1877_vm1, %v1876_v36  ;;  %1690 = vmatpush3.bf16.msra.mxu1 %v1765_v30 }
 0x82f   : > { %1691 = vmatprep.subr.bf16.mxu1 %v1876_v36 }
 0x832   : > { %1692 = vmatpush3.bf16.msra.mxu1 %v1766_v31  ;;  %v1240_v31 = vsub.s32 6, %v2014_v43 }
 0x833   : > { %1693 = vmatprep.subr.bf16.mxu1 %v1876_v36 }
 0x836   : > { %1694 = vmatpush3.bf16.msra.mxu1 %v1767_v32  ;;  %v1246_v32 = vsub.s32 7, %v2014_v43 }
 0x837   : > { %1695 = vmatprep.subr.bf16.mxu1 %v1876_v36 }
 0x83a   : > { %1696 = vmatpush3.bf16.msra.mxu1 %v1768_v33  ;;  %v1241_v33 = vrot.slane %v1971_v1, %v1240_v31 }
 0x900   : > { %v1009_v57 = vpop.f32.mrb[16].mxu1 }
 0x901   : > { %v1010_v58 = vadd.f32 %v1009_v57, %v965_v56  ;;  %v1679_v60 = vpop.f32.mrb[17].mxu1 }
 0x902   : > { %v1012_v61 = vpop.f32.mrb[18].mxu1 }
 0x903   : > { %v1013_v62 = vadd.f32 %v1012_v61, %v965_v56  ;;  %v1680_v63 = vpop.f32.mrb[19].mxu1  ;;  %v1016_v52 = vadd.f32 %v1010_v58, %v1997_v39 }
 0x905   : > { %v1018_v47 = vsel %vm441_vm2, %v1016_v52, 0.0  ;;  %v1017_v2 = vadd.f32 %v1013_v62, %v1999_v40  ;;  %v1763_v40 = vld [vmem:[%s1964_s21 + $0x4] ss:$8 sps:$4 sm:$0xff]  }
 0x906   : > { %1019 = vadd.xlane.f32.xlu1 %v1018_v47  ;;  %1682 = vmatpush3.bf16.msra.mxu0 %v1763_v40 }
 0x907   : > { %v1021_v3 = vsel %vm441_vm2, %v1017_v2, 0.0  ;;  %1683 = vmatprep.subr.bf16.mxu0 %v1876_v36 }
 0x908   : > { %1022 = vadd.xlane.f32.xlu0 %v1021_v3 }
 0x90a   : > { %1684 = vmatpush3.bf16.msra.mxu0 %v1764_v59 }
 0x993   : > { %v1020_v5 = vpop.xlane.xlu1 %1019 }
 0x994   : > { %v1025_v6 = vmul.f32 0.03125, %v1020_v5 }
 0x995   : > { %v1023_v7 = vpop.xlane.xlu0 %1022 }
 0x996   : > { %v1027_v8 = vsub.f32 %v1016_v52, %v1025_v6  ;;  %v1026_v9 = vmul.f32 0.03125, %v1023_v7  ;;  %v1139_v7 = vsub.s32 5, %v2014_v43 }
 0x998   : > { %v1028_v10 = vsub.f32 %v1017_v2, %v1026_v9  ;;  %v1029_v11 = vmul.f32 %v1027_v8, %v1027_v8 }
 0x99a   : > { %v1031_v12 = vsel %vm441_vm2, %v1029_v11, 0.0  ;;  %v1030_v39 = vmul.f32 %v1028_v10, %v1028_v10 }
 0x99b   : > { %1032 = vadd.xlane.f32.xlu0 %v1031_v12 }
 0x99c   : > { %v1034_v13 = vsel %vm441_vm2, %v1030_v39, 0.0 }
 0x99d   : > { %1035 = vadd.xlane.f32.xlu1 %v1034_v13 }
 0xa28   : > { %v1033_v14 = vpop.xlane.xlu0 %1032 }
 0xa29   : > { %v1037_v15 = vmul.f32 0.03125, %v1033_v14 }
 0xa2a   : > { %v1036_v16 = vpop.xlane.xlu1 %1035 }
 0xa2b   : > { %v1039_v17 = vadd.f32 1e-12, %v1037_v15  ;;  %v1038_v4 = vmul.f32 0.03125, %v1036_v16 }
 0xa2d   : > { %1785 = vrsqrt.f32 %v1039_v17  ;;  %v1040_v18 = vadd.f32 1e-12, %v1038_v4 }
 0xa2f   : > { %1787 = vrsqrt.f32 %v1040_v18 }
 0xa37   : > { %v1786_v21 = vpop.eup %1785 }
 0xa38   : > { %v1043_v22 = vmul.f32 %v1786_v21, %v1027_v8  ;;  %v1140_v8 = vrot.slane %v1971_v1, %v1139_v7 }
 0xa39   : > { %v1788_v23 = vpop.eup %1787 }
 0xa3a   : > { %v1049_v24 = vmul.f32 %v1048_v53, %v1043_v22  ;;  %v1044_v25 = vmul.f32 %v1788_v23, %v1028_v10 }
 0xa3c   : > { %v1050_v27 = vmul.f32 %v1048_v53, %v1044_v25  ;;  %v1055_v28 = vadd.f32 %v1054_v26, %v1049_v24 }
 0xa3e   : > { %v1056_v50 = vadd.f32 %v1054_v26, %v1050_v27 }
 0xa40   : > { %v1057_v29 = vpack.c.bf16 %v1056_v50, %v1055_v28 }
 0xa42   : > { %1686 = vmatmul.mubr.msk.bf16.vlgmr.msra.gmra.mrb[20].mxu0 %vm441_vm2, %v1057_v29 }
 0xb15   : > { %v1111_v41 = vpop.f32.mrb[20].mxu0 }
 0xb16   : > { %v1112_v44 = vadd.f32 %v1111_v41, %v1061_v35  ;;  %v1687_v45 = vpop.f32.mrb[21].mxu0  ;;  %v1247_v41 = vrot.slane %v1971_v1, %v1246_v32  ;;  %v1799_v1 = vld [vmem:[%s2240_s4 + $0x8] sm:$0xff] (!%p1567_p5)  }
 0xb17   : > { %v1114_v37 = vpop.f32.mrb[22].mxu0 }
 0xb18   : > { %v1120_v38 = vmul.f32 0.044715, %v1112_v44  ;;  %v1115_v46 = vadd.f32 %v1114_v37, %v1061_v35  ;;  %v1688_v48 = vpop.f32.mrb[23].mxu0  ;;  %v1118_v52 = vmul.f32 0.5, %v1112_v44 }
 0xb1a   : > { %v1122_v49 = vmul.f32 %v1120_v38, %v1112_v44  ;;  %v1121_v51 = vmul.f32 0.044715, %v1115_v46  ;;  %v1119_v47 = vmul.f32 0.5, %v1115_v46 }
 0xb1c   : > { %v1124_v54 = vmul.f32 %v1122_v49, %v1112_v44  ;;  %v1123_v55 = vmul.f32 %v1121_v51, %v1115_v46  ;;  %v1798_v51 = vld [vmem:[%s2240_s4] sm:$0xff] (!%p1567_p5)  }
 0xb1e   : > { %v1126_v56 = vadd.f32 %v1124_v54, %v1112_v44  ;;  %v1125_v36 = vmul.f32 %v1123_v55, %v1115_v46  ;;  %v1885_v54 = vmov (!%p1567_p5), 0.0  }
 0xb1f   : > { %1701 = vmatprep.subr.bf16.mxu0 (!%p1567_p5), %v1885_v54  ;;  %1709 = vmatprep.subr.bf16.mxu1 (!%p1567_p5), %v1885_v54 }
 0xb20   : > { %v1128_v57 = vmul.f32 0.7978846, %v1126_v56  ;;  %v1127_v58 = vadd.f32 %v1125_v36, %v1115_v46  ;;  %1702 = vmatpush3.bf16.msra.mxu0 (!%p1567_p5), %v1798_v51  ;;  %1705 = vmatprep.mubr.msk.bf16.mxu0 (!%p1567_p5), %vm1886_vm7, %v1885_v54 }
 0xb21   : > { %1703 = vmatprep.subr.bf16.mxu0 (!%p1567_p5), %v1885_v54 }
 0xb22   : > { %1789 = vtanh.f32 %v1128_v57  ;;  %v1129_v60 = vmul.f32 0.7978846, %v1127_v58 }
 0xb24   : > { %1791 = vtanh.f32 %v1129_v60  ;;  %1704 = vmatpush3.bf16.msra.mxu0 (!%p1567_p5), %v1799_v1 }
 0xb2c   : > { %v1790_v61 = vpop.eup %1789 }
 0xb2d   : > { %v1132_v62 = vadd.f32 1.0, %v1790_v61 }
 0xb2e   : > { %v1792_v63 = vpop.eup %1791 }
 0xb2f   : > { %v1133_v2 = vadd.f32 1.0, %v1792_v63  ;;  %v1134_v3 = vmul.f32 %v1132_v62, %v1118_v52 }
 0xb31   : > { %v1135_v5 = vmul.f32 %v1133_v2, %v1119_v47  ;;  %v1267_v2 = vrot.slane (!%p1567_p5), %v1955_v0, %v1047_v19 }
 0xb33   : > { %v1136_v6 = vpack.c.bf16 %v1135_v5, %v1134_v3 }
 0xb35   : > { %1698 = vmatmul.mubr.msk.bf16.vlgmr.msra.gmra.mrb[20].mxu1 %vm1165_vm6, %v1136_v6 }
 0xb36   : > { %1713 = vmatprep.mubr.msk.bf16.mxu1 (!%p1567_p5), %vm1886_vm7, %v1885_v54 }
 0xc08   : > { %v1203_v9 = vpop.f32.mrb[20].mxu1 }
 0xc09   : > { %v1204_v10 = vadd.f32 %v1203_v9, %v1140_v8  ;;  %v1699_v11 = vpop.f32.mrb[21].mxu1 }
 0xc0a   : > { %v1206_v12 = vpop.f32.mrb[22].mxu1  ;;  %v1336_v11 = vrot.slane (!%p1567_p5), %v1955_v0, %v1053_v20 }
 0xc0b   : > { %v1207_v39 = vadd.f32 %v1206_v12, %v1140_v8  ;;  %v1700_v13 = vpop.f32.mrb[23].mxu1  ;;  %v1210_v40 = vadd.f32 %v1204_v10, %v1055_v28 }
 0xc0d   : > { %v1212_v59 = vsel %vm441_vm2, %v1210_v40, 0.0  ;;  %v1211_v14 = vadd.f32 %v1207_v39, %v1056_v50 }
 0xc0e   : > { %1213 = vadd.xlane.f32.xlu0 %v1212_v59 }
 0xc0f   : > { %v1215_v15 = vsel %vm441_vm2, %v1211_v14, 0.0 }
 0xc10   : > { %1216 = vadd.xlane.f32.xlu1 %v1215_v15  ;;  %v1403_v15 = vld [vmem:[%s2238_s2] sm:$0x3] (!%p1567_p5) }
 0xc9b   : > { %v1214_v16 = vpop.xlane.xlu0 %1213 }
 0xc9c   : > { %v1218_v17 = vmul.f32 0.03125, %v1214_v16  ;;  %v1888_v16 = vmov (!%p1567_p5), 0  }
 0xc9d   : > { %v1217_v4 = vpop.xlane.xlu1 %1216  ;;  %1797 = vset.pattern.permute.xlu0 (!%p1567_p5), %v1888_v16 }
 0xc9e   : > { %v1220_v18 = vsub.f32 %v1210_v40, %v1218_v17  ;;  %v1219_v53 = vmul.f32 0.03125, %v1217_v4 }
 0xca0   : > { %v1221_v21 = vsub.f32 %v1211_v14, %v1219_v53  ;;  %v1222_v22 = vmul.f32 %v1220_v18, %v1220_v18 }
 0xca2   : > { %v1224_v23 = vsel %vm441_vm2, %v1222_v22, 0.0  ;;  %v1223_v24 = vmul.f32 %v1221_v21, %v1221_v21 }
 0xca3   : > { %1225 = vadd.xlane.f32.xlu0 %v1224_v23 }
 0xca4   : > { %v1227_v25 = vsel %vm441_vm2, %v1223_v24, 0.0  ;;  %v1413_v24 = vrot.slane (!%p1567_p5), %v1955_v0, %v1060_v34 }
 0xca5   : > { %1228 = vadd.xlane.f32.xlu1 %v1227_v25 }
 0xcb9   : > { %1337 = vrot.lane.b32.xlu0 (!%p1567_p5), %v1798_v51, %s1887_s25 }
 0xcbd   : > { %1339 = vrot.lane.b32.xlu0 (!%p1567_p5), %v1799_v1, %s1887_s25 }
 0xcc1   : > { %1405 = vperm.xlu0 (!%p1567_p5), %1797, %v1403_v15  }
 0xd30   : > { %v1226_v26 = vpop.xlane.xlu0 %1225 }
 0xd31   : > { %v1230_v27 = vmul.f32 0.03125, %v1226_v26 }
 0xd32   : > { %v1229_v28 = vpop.xlane.xlu1 %1228 }
 0xd33   : > { %v1232_v50 = vadd.f32 1e-12, %v1230_v27  ;;  %v1231_v29 = vmul.f32 0.03125, %v1229_v28 }
 0xd34   : > { %v1338_v52 = vpop.permute.xlu0 (!%p1567_p5), %1337 }
 0xd35   : > { %1793 = vrsqrt.f32 %v1232_v50  ;;  %v1233_v30 = vadd.f32 1e-12, %v1231_v29  ;;  %1710 = vmatpush3.bf16.msra.mxu1 (!%p1567_p5), %v1338_v52 }
 0xd36   : > { %1711 = vmatprep.subr.bf16.mxu1 (!%p1567_p5), %v1885_v54 }
 0xd37   : > { %1795 = vrsqrt.f32 %v1233_v30 }
 0xd38   : > { %v1340_v47 = vpop.permute.xlu0 (!%p1567_p5), %1339 }
 0xd39   : > { %1712 = vmatpush3.bf16.msra.mxu1 (!%p1567_p5), %v1340_v47 }
 0xd3f   : > { %v1794_v35 = vpop.eup %1793 }
 0xd40   : > { %v1236_v44 = vmul.f32 %v1794_v35, %v1220_v18  ;;  %v1406_v22 = vpop.permute.xlu0 (!%p1567_p5), %1405 }
 0xd41   : > { %v1796_v45 = vpop.eup %1795 }
 0xd42   : > { %v1242_v37 = vmul.f32 %v1241_v33, %v1236_v44  ;;  %v1237_v38 = vmul.f32 %v1796_v45, %v1221_v21  ;;  %1255 = sbr.rel (%p1567_p5) target bundleno = 4341 (0x10f5), region = 60  ;;  %v1402_v21 = vand.u32 (!%p1567_p5), 127, %v425_v42 }
 0xd44   : > { %v1248_v46 = vadd.f32 %v1247_v41, %v1242_v37  ;;  %v1243_v48 = vmul.f32 %v1241_v33, %v1237_v38  ;;  %vm1407_vm10 = vcmp.eq.s32.totalorder (!%p1567_p5), %v1406_v22, %v1402_v21 }
 0xd45   : > { %v1572_v23 = vsel (!%p1567_p5), %vm1407_vm10, 1.0, %v1885_v54 }
 0xd46   : > { %1250 = vst.msk [vmem:[#allocation2] sm:$0xff] %vm441_vm2, %v1248_v46  ;;  %v1249_v49 = vadd.f32 %v1247_v41, %v1243_v48  ;;  %v1414_v25 = vmul.f32 (!%p1567_p5), %v1572_v23, %v1413_v24 }
 0xd48   : > { %1251 = vst.msk [vmem:[#allocation2 + $0x8] sm:$0xff] %vm441_vm2, %v1249_v49  ;;  %v1415_v26 = vsel (!%p1567_p5), %vm1387_vm9, %v1414_v25, 0.0 }
 0xd4d   : > { %v1256_v55 = vld [vmem:[#allocation2] sm:$0xff] }
 0xd4e   : > { %v1262_v36 = vpack.c.bf16 %v1256_v55, %v1256_v55 }
 0xd4f   : > { %v1257_v56 = vld [vmem:[#allocation2 + $0x8] sm:$0xff] }
 0xd50   : > { %v1263_v57 = vpack.c.bf16 %v1257_v56, %v1257_v56  ;;  %v1270_v58 = vunpack.c.l.b16 %v1262_v36 }
 0xd52   : > { %v1271_v60 = vunpack.c.l.b16 %v1263_v57 }
 0xd54   : > { %v1272_v61 = vrot.slane %v1271_v60, 7 }
 0xd56   : > { %v1274_v62 = vsel %vm1273_vm8, %v1272_v61, %v1270_v58 }
 0xd57   : > { %v1275_v63 = vpack.c.b16 %v1274_v62, %v1274_v62 }
 0xd59   : > { %1706 = vmatmul.mubr.msk.bf16.vlgmr.msra.gmra.mrb[0].mxu0 %vm441_vm2, %v1275_v63 }
 0xe2c   : > { %v1325_v3 = vpop.f32.mrb[0].mxu0 }
 0xe2d   : > { %v1326_v5 = vadd.f32 %v1325_v3, %v1267_v2  ;;  %v1707_v6 = vpop.f32.mrb[1].mxu0 }
 0xe2e   : > { %v1328_v7 = vpop.f32.mrb[2].mxu0 }
 0xe2f   : > { %1800 = vtanh.f32 %v1326_v5  ;;  %v1708_v8 = vpop.f32.mrb[3].mxu0 }
 0xe39   : > { %v1801_v9 = vpop.eup %1800 }
 0xe3a   : > { %v1332_v10 = vpack.c.bf16 %v1801_v9, %v1801_v9 }
 0xe3c   : > { %1714 = vmatmul.mubr.msk.bf16.vlgmr.msra.gmra.mrb[0].mxu1 %vm441_vm2, %v1332_v10 }
 0xf0f   : > { %v1380_v12 = vpop.f32.mrb[0].mxu1 }
 0xf10   : > { %v1381_v39 = vadd.f32 %v1380_v12, %v1336_v11  ;;  %v1715_v13 = vpop.f32.mrb[1].mxu1 }
 0xf11   : > { %v1383_v40 = vpop.f32.mrb[2].mxu1 }
 0xf12   : > { %v1386_v19 = vmax.f32 %v1381_v39, 0.0  ;;  %v1716_v59 = vpop.f32.mrb[3].mxu1 }
 0xf14   : > { %1388 = vst.msk [vmem:[#allocation5] sm:$0x3] %vm1387_vm9, %v1386_v19  ;;  %v1389_v14 = vsel %vm1387_vm9, %v1386_v19, -inf }
 0xf15   : > { %1390 = vmax.xlane.f32.xlu1 %v1389_v14 }
 0xfa2   : > { %v1391_v20 = vpop.xlane.xlu1 %1390 }
 0xfa3   : > { %v1392_v17 = vsub.f32 %v1386_v19, %v1391_v20 }
 0xfa5   : > { %v1393_v4 = vmul.f32 1.442695, %v1392_v17 }
 0xfa7   : > { %1802 = vpow2.f32 %v1393_v4 }
 0xfb1   : > { %v1803_v18 = vpop.eup %1802 }
 0xfb2   : > { %v1395_v53 = vsel %vm1387_vm9, %v1803_v18, 0.0 }
 0xfb3   : > { %1396 = vadd.xlane.f32.xlu1 %v1395_v53 }
 0xfb7   : > { %1416 = vadd.xlane.f32.xlu1 %v1415_v26 }
0x1040   : > { %v1397_v27 = vpop.xlane.xlu1 %1396 }
0x1041   : > { %1804 = vlog2.f32 %v1397_v27 }
0x1044   : > { %v1417_v31 = vpop.xlane.xlu1 %1416 }
0x1045   : > { %v1432_v32 = vsel %vm1424_vm11, %v1417_v31, 0.0 }
0x1046   : > { %v1433_v33 = vrot.slane %v1432_v32, 4 }
0x1048   : > { %v1434_v43 = vadd.f32 %v1433_v33, %v1432_v32 }
0x104a   : > { %v1435_v35 = vrot.slane %v1434_v43, 2 }
0x104b   : > { %v1805_v28 = vpop.eup %1804 }
0x104c   : > { %v1399_v50 = vmul.f32 0.6931472, %v1805_v28  ;;  %v1436_v0 = vadd.f32 %v1435_v35, %v1434_v43 }
0x104e   : > { %v1400_v29 = vsub.f32 %v1392_v17, %v1399_v50  ;;  %v1437_v34 = vrot.slane %v1436_v0, 1 }
0x1050   : > { %v1418_v30 = vmul.f32 %v1572_v23, %v1400_v29  ;;  %v1438_v45 = vadd.f32 %v1437_v34, %v1436_v0 }
0x1052   : > { %v1419_v42 = vsel %vm1387_vm9, %v1418_v30, 0.0  ;;  %1806 = vrcp.f32 %v1438_v45 }
0x1053   : > { %1420 = vadd.xlane.f32.xlu1 %v1419_v42 }
0x105c   : > { %v1807_v55 = vpop.eup %1806 }
0x10e0   : > { %v1421_v41 = vpop.xlane.xlu1 %1420 }
0x10e1   : > { %v1422_v44 = vsub.f32 0.0, %v1421_v41 }
0x10e3   : > { %v1423_v37 = vmul.f32 %v1422_v44, %v1417_v31 }
0x10e5   : > { %v1425_v38 = vsel %vm1424_vm11, %v1423_v37, 0.0 }
0x10e6   : > { %v1426_v46 = vrot.slane %v1425_v38, 4 }
0x10e8   : > { %v1427_v48 = vadd.f32 %v1426_v46, %v1425_v38 }
0x10ea   : > { %v1428_v49 = vrot.slane %v1427_v48, 2 }
0x10ec   : > { %v1429_v51 = vadd.f32 %v1428_v49, %v1427_v48 }
0x10ee   : > { %v1430_v54 = vrot.slane %v1429_v51, 1 }
0x10f0   : > { %v1431_v1 = vadd.f32 %v1430_v54, %v1429_v51 }
0x10f2   : > { %v1440_v56 = vmul.f32 %v1807_v55, %v1431_v1 }
0x10f4   : > { %1442 = vst.msk [vmem:[#allocation3] sm:$0x1] %vm1441_vm12, %v1440_v56 }
0x10f5 PF: > { %p1725_p6 = scmp.eq.s32.totalorder %s1947_s10, 1  ;;  %s1889_s28 = smov [#allocation3]  }
0x10f6   : > { %s1450_s29 = sshll.u32 %s1889_s28, 4  ;;  %s1890_s11 = smov [#allocation5]   ;;  %s1451_s29 = int_to_ptr.vmem [resolvable:$true] %s1450_s29 }
0x10f7   : > { %s1461_s12 = sshll.u32 %s1890_s11, 4  ;;  %s1808_s13 = scalar_lea.vmem %s1451_s29, 16  ;;  %s1462_s12 = int_to_ptr.vmem [resolvable:$true] %s1461_s12 }
0x10f8   : > { %p1809_p7 = scmp.ne.s32.totalorder %s1451_s29, %s1808_s13  ;;  %s1814_s14 = scalar_lea.vmem %s1451_s29, 32 }
0x10f9   : > { %p1815_p10 = scmp.lt.s32.totalorder %s1451_s29, %s1451_s29  ;;  %p1816_p11 = scmp.lt.s32.totalorder %s1814_s14, %s1808_s13 }
0x10fa   : > { %p1810_p8 = pnand %p1809_p7, %p1725_p6 }
0x10fb   : > { %p1817_p12 = por %p1816_p11, %p1815_p10 }
0x10fc   : > { %p1811_p9 = pneg %p1810_p8 }
0x10fe   : > { %p1818_p13 = pnand %p1817_p12, %p1811_p9 }
0x1100   : > { %1821 = shalt.err (!%p1818_p13)
}
0x1101   : > { %s1822_s17 = scalar_lea.hbm %s2244_s8, 16 }
0x1102   : > { %p1823_p0 = scmp.ne.s32.totalorder %s2244_s8, %s1822_s17  ;;  %p1828_p3 = scmp.lt.u32.totalorder %s1822_s17, %s2244_s8 }
0x1104   : > { %p1824_p1 = pnand %p1823_p0, %p1725_p6 }
0x1106   : > { %p1825_p2 = pneg %p1824_p1 }
0x1108   : > { %p1830_p4 = pnand %p1828_p3, %p1825_p2 }
0x110a   : > { %1833 = shalt.err (!%p1830_p4)
}
0x110b   : > { %1718 = dma.vmem_to_hbm [thread:$0]  (%p1725_p6), %s1451_s29, 16, %s2244_s8, [#allocation4]  }
0x110c   : > { %s1834_s24 = scalar_lea.vmem %s1462_s12, 32  ;;  %p1841_p9 = scmp.lt.s32.totalorder %s1462_s12, %s1462_s12 }
0x110d   : > { %p1835_p5 = scmp.ne.s32.totalorder %s1462_s12, %s1834_s24  ;;  %p1842_p10 = scmp.lt.s32.totalorder %s1834_s24, %s1834_s24 }
0x110f   : > { %p1836_p7 = pnand %p1835_p5, %p1725_p6  ;;  %p1843_p11 = por %p1842_p10, %p1841_p9 }
0x1111   : > { %p1837_p8 = pneg %p1836_p7 }
0x1113   : > { %p1844_p12 = pnand %p1843_p11, %p1837_p8 }
0x1115   : > { %1847 = shalt.err (!%p1844_p12)
}
0x1116   : > { %s1848_s27 = scalar_lea.hbm %s2245_s9, 32 }
0x1117   : > { %p1849_p13 = scmp.ne.s32.totalorder %s2245_s9, %s1848_s27  ;;  %p1854_p2 = scmp.lt.u32.totalorder %s1848_s27, %s2245_s9 }
0x1119   : > { %p1850_p0 = pnand %p1849_p13, %p1725_p6 }
0x111b   : > { %p1851_p1 = pneg %p1850_p0 }
0x111d   : > { %p1856_p3 = pnand %p1854_p2, %p1851_p1 }
0x111f   : > { %1859 = shalt.err (!%p1856_p3)
}
0x1120   : > { %1720 = dma.vmem_to_hbm [thread:$0]  (%p1725_p6), %s1462_s12, 32, %s2245_s9, [#allocation6]  }
0x1121   : > { %1865 = dma.done.wait (%p1725_p6), [#allocation4], 16  }
0x1122   : > { %1867 = vsyncadd (%p1725_p6), [#allocation4], 4294967280 }
0x1123   : > { %1869 = dma.done.wait (%p1725_p6), [#allocation6], 32  }
0x1124   : > { %1871 = vsyncadd (%p1725_p6), [#allocation6], 4294967264 }
0x1125 PF: > { %s22_s30 = sadd.s32 1, %s1874_s30  }
0x1126   : > { %p19_p4 = scmp.ge.s32.totalorder %s22_s30, 4  }
0x1128   :  { %21 = sbr.rel (!%p19_p4) target bundleno = 2 (0x2), region = 101 }
0x112f   :  { %1478 = vsyncpa [#allocation4], 1 }
0x1130   :  { %1480 = vsyncpa [#allocation4 + $0x1], 1 }
0x1131   :  { %1481 = vsyncpa [#allocation6], 1 }

</bundles_post_ra>
